<compile_context>
chip_gen: v7x
topology: tpu7x:2x2x1
jax: 0.10.0
libtpu: 0.0.40
codegen_flags: <defaults>
</compile_context>

<pallas_src>
import jax
import jax.numpy as jnp
from jax.experimental import pallas as pl
from jax.experimental.pallas import tpu as pltpu


def _pick_tq(S: int) -> int:
    """Largest friendly query-tile that divides S (falls back to S)."""
    for t in (512, 256, 128):
        if S % t == 0:
            return t
    return S
    # TODO(synk): online-softmax / padded tail for very long S with no nice divisor.


def _use_bf16_exp() -> bool:
    """bf16 EUP exists on v6e / v7x only; keep f32 exp elsewhere (v5e has no bf16 VPU/EUP)."""
    try:
        kind = jax.devices()[0].device_kind.lower()
    except Exception:
        return False
    return any(tag in kind for tag in ("v6", "v7", "tpu7"))


def _make_kernel(nhead: int, d_model: int, tq: int, use_bf16_exp: bool):
    head_dim = d_model // nhead
    eps = 1e-5
    bf16 = jnp.bfloat16

    def _layernorm(x, g, b):
        mu = jnp.mean(x, axis=-1, keepdims=True)
        var = jnp.mean((x - mu) ** 2, axis=-1, keepdims=True)
        return (x - mu) * jax.lax.rsqrt(var + eps) * g + b

    def _split_heads(t):
        # (N, D) -> (H, N, hd): one reshape + one XLU transpose.
        n = t.shape[0]
        return jnp.transpose(t.reshape(n, nhead, head_dim), (1, 0, 2))

    def kernel(src_ref, pos_ref,
               wq_ref, wk_ref, wv_ref, wo_ref, w1_ref, w2_ref,
               b1_ref, bias_ref,
               o_ref,
               k3_scr, v3_scr):
        qi = pl.program_id(1)

        # ---- K / V projections over the full sequence: once per batch step ----
        @pl.when(qi == 0)
        def _():
            x_full = src_ref[0].astype(jnp.float32)                        # (S, D)
            xp_full = x_full + pos_ref[0].astype(jnp.float32)              # k input = src + pos
            k = jnp.dot(xp_full.astype(bf16), wk_ref[...],
                        preferred_element_type=jnp.float32) + bias_ref[1:2, :]
            v = jnp.dot(x_full.astype(bf16), wv_ref[...],
                        preferred_element_type=jnp.float32) + bias_ref[2:3, :]
            k3_scr[...] = _split_heads(k).astype(bf16)                      # (H, S, hd)
            v3_scr[...] = _split_heads(v).astype(bf16)

        # ---- query tile ----
        row0 = pl.multiple_of(qi * tq, tq)
        x_t = src_ref[0, pl.ds(row0, tq), :].astype(jnp.float32)            # (TQ, D)
        xp_t = x_t + pos_ref[0, pl.ds(row0, tq), :].astype(jnp.float32)     # q input = src + pos

        # q projection (1/sqrt(hd) scale folded into wq / bq on the host)
        q = jnp.dot(xp_t.astype(bf16), wq_ref[...],
                    preferred_element_type=jnp.float32) + bias_ref[0:1, :]
        q3 = _split_heads(q).astype(bf16)                                    # (H, TQ, hd)

        # ---- head-batched scaled dot-product attention ----
        s = jnp.einsum('hqe,hke->hqk', q3, k3_scr[...],
                       preferred_element_type=jnp.float32)                   # (H, TQ, S)
        s = s - jnp.max(s, axis=-1, keepdims=True)
        if use_bf16_exp:
            # EUP (single slot) is the attention bottleneck on v6e/v7x; bf16 exp ~2x throughput.
            e = jnp.exp(s.astype(bf16)).astype(jnp.float32)
        else:
            e = jnp.exp(s)
        a = e * pl.reciprocal(jnp.sum(e, axis=-1, keepdims=True), approx=True)
        o3 = jnp.einsum('hqk,hke->hqe', a.astype(bf16), v3_scr[...],
                        preferred_element_type=jnp.float32)                  # (H, TQ, hd)

        # ---- head recombine + single K=D out-projection ----
        o2d = jnp.transpose(o3, (1, 0, 2)).reshape(tq, d_model)              # (TQ, D)
        attn = jnp.dot(o2d.astype(bf16), wo_ref[...],
                       preferred_element_type=jnp.float32) + bias_ref[3:4, :]

        # ---- residual + LayerNorm1 (dropout1 = identity) ----
        x1 = _layernorm(x_t + attn, bias_ref[5:6, :], bias_ref[6:7, :])

        # ---- feed-forward: linear1 -> relu -> linear2 (dropout = identity) ----
        h1 = jnp.dot(x1.astype(bf16), w1_ref[...],
                     preferred_element_type=jnp.float32) + b1_ref[...]
        h1 = jnp.maximum(h1, 0.0).astype(bf16)        # drop the f32 (TQ,DFF) slab immediately
        ff = jnp.dot(h1, w2_ref[...],
                     preferred_element_type=jnp.float32) + bias_ref[4:5, :]

        # ---- residual + LayerNorm2 (dropout2 = identity) ----
        x2 = _layernorm(x1 + ff, bias_ref[7:8, :], bias_ref[8:9, :])

        o_ref[0] = x2.astype(o_ref.dtype)

    return kernel


def _vmem_limit_bytes(S, TQ, D, DFF, H):
    bf16, f32 = 2, 4
    hd = D // H
    weights = (4 * D * D + 2 * D * DFF) * bf16            # wq,wk,wv,wo,w1,w2 (single-buffered)
    biases = (DFF + 16 * D) * f32
    io = 2 * (2 * S * D + TQ * D) * f32                   # double-buffered src/pos in, out tile
    kv_scratch = 2 * H * S * hd * bf16
    interm = (3 * S * D * f32                              # x_full, xp_full, k/v f32 (qi==0)
              + H * TQ * S * 2 * f32                       # scores + exp
              + H * TQ * hd * (f32 + bf16)                 # o3 + bf16 q3
              + TQ * DFF * (f32 + bf16)                    # h1 f32 + bf16
              + 6 * TQ * D * f32)                          # residual / LN temporaries
    est = weights + biases + io + kv_scratch + interm
    try:
        cap = pltpu.get_tpu_info().vmem_capacity_bytes     # never exceed physical VMEM (v7x: 64 MiB)
    except Exception:
        cap = 64 * 2 ** 20
    return int(min(int(0.8 * cap), max(32 * 2 ** 20, 2 * est)))


def transformer_encoder_layer(src, pos, params, *, nhead):
    """src, pos: (S, B, D) float32 (sequence-first, like nn.MultiheadAttention).

    Returns (S, B, D) float32; matches TransformerEncoderLayer.forward_post in
    eval mode with src_mask = src_key_padding_mask = None."""
    S, B, D = src.shape
    DFF = params["w1"].shape[0]
    assert D % nhead == 0
    hd = D // nhead
    scale = 1.0 / (hd ** 0.5)
    bf16 = jnp.bfloat16

    TQ = _pick_tq(S)
    n_qt = S // TQ

    # Kernel operates on batch-first dense (S, D) slabs (lane axis = D).
    src_b = jnp.transpose(src, (1, 0, 2))   # (B, S, D)
    pos_b = jnp.transpose(pos, (1, 0, 2))

    # --- one-time host-side parameter prep: split / transpose / scale / cast ---
    wq, wk, wv = params["in_w"][0:D], params["in_w"][D:2 * D], params["in_w"][2 * D:3 * D]
    bq, bk, bv = params["in_b"][0:D], params["in_b"][D:2 * D], params["in_b"][2 * D:3 * D]

    w_q = (wq.T * scale).astype(bf16)                 # (D, D), 1/sqrt(hd) folded in
    w_k = wk.T.astype(bf16)                           # (D, D)
    w_v = wv.T.astype(bf16)                           # (D, D)
    w_o = params["out_w"].T.astype(bf16)              # (D, D)  single K=D out-projection
    w_1 = params["w1"].T.astype(bf16)                 # (D, DFF)
    w_2 = params["w2"].T.astype(bf16)                 # (DFF, D)
    b_1 = params["b1"].reshape(1, DFF)

    # Pack all D-wide vectors into a single (16, D) slab (one DMA, one block).
    bias_rows = jnp.stack([bq * scale, bk, bv,
                           params["out_b"], params["b2"],
                           params["ln1_g"], params["ln1_b"],
                           params["ln2_g"], params["ln2_b"]], axis=0)       # (9, D)
    bias_d = jnp.zeros((16, D), jnp.float32).at[:9].set(bias_rows)

    kernel = _make_kernel(nhead, D, TQ, _use_bf16_exp())

    def const_spec(shape):
        # Constant across the grid -> single-buffer (halves resident weight VMEM).
        return pl.BlockSpec(shape, lambda b, qi: (0,) * len(shape),
                            pipeline_mode=pl.Buffered(1))

    out = pl.pallas_call(
        kernel,
        out_shape=jax.ShapeDtypeStruct((B, S, D), jnp.float32),
        grid_spec=pltpu.PrefetchScalarGridSpec(
            num_scalar_prefetch=0,
            grid=(B, n_qt),
            in_specs=[
                pl.BlockSpec((1, S, D), lambda b, qi: (b, 0, 0)),   # src (resident over qi)
                pl.BlockSpec((1, S, D), lambda b, qi: (b, 0, 0)),   # pos (resident over qi)
                const_spec((D, D)),        # Wq (scaled)
                const_spec((D, D)),        # Wk
                const_spec((D, D)),        # Wv
                const_spec((D, D)),        # Wout
                const_spec((D, DFF)),      # linear1.weight.T
                const_spec((DFF, D)),      # linear2.weight.T
                const_spec((1, DFF)),      # linear1.bias
                const_spec((16, D)),       # packed D-wide bias / LN vectors
            ],
            out_specs=pl.BlockSpec((1, TQ, D), lambda b, qi: (b, qi, 0)),
            scratch_shapes=[
                pltpu.VMEM((nhead, S, hd), bf16),   # K, head-split, cached per batch step
                pltpu.VMEM((nhead, S, hd), bf16),   # V, head-split, cached per batch step
            ],
        ),
        compiler_params=pltpu.CompilerParams(
            dimension_semantics=("parallel", "arbitrary"),
            vmem_limit_bytes=_vmem_limit_bytes(S, TQ, D, DFF, nhead)),
    )(src_b, pos_b, w_q, w_k, w_v, w_o, w_1, w_2, b_1, bias_d)

    return jnp.transpose(out, (1, 0, 2))


def _reference(src, pos, params, *, nhead):
    """Pure-JAX f32 reference (mirrors forward_post in eval mode)."""
    S, B, D = src.shape
    hd = D // nhead
    scale = 1.0 / (hd ** 0.5)

    def ln(x, g, b):
        mu = jnp.mean(x, axis=-1, keepdims=True)
        var = jnp.mean((x - mu) ** 2, axis=-1, keepdims=True)
        return (x - mu) / jnp.sqrt(var + 1e-5) * g + b

    x = jnp.transpose(src, (1, 0, 2))   # (B, S, D)
    p = jnp.transpose(pos, (1, 0, 2))
    qk = x + p
    wq, wk, wv = jnp.split(params["in_w"], 3, axis=0)
    bq, bk, bv = jnp.split(params["in_b"], 3)
    q = qk @ wq.T + bq
    k = qk @ wk.T + bk
    v = x @ wv.T + bv

    def split_heads(t):   # (B,S,D) -> (B,H,S,hd)
        return jnp.transpose(t.reshape(B, S, nhead, hd), (0, 2, 1, 3))

    qh, kh, vh = split_heads(q), split_heads(k), split_heads(v)
    s = jnp.einsum("bhqd,bhkd->bhqk", qh, kh) * scale
    a = jax.nn.softmax(s, axis=-1)
    o = jnp.einsum("bhqk,bhkd->bhqd", a, vh)
    o = jnp.transpose(o, (0, 2, 1, 3)).reshape(B, S, D)
    o = o @ params["out_w"].T + params["out_b"]

    x = ln(x + o, params["ln1_g"], params["ln1_b"])
    ff = jnp.maximum(x @ params["w1"].T + params["b1"], 0.0) @ params["w2"].T + params["b2"]
    x = ln(x + ff, params["ln2_g"], params["ln2_b"])
    return jnp.transpose(x, (1, 0, 2))


if __name__ == "__main__":
    S, B, D, NHEAD, DFF = 16, 2, 128, 4, 256

    key = jax.random.PRNGKey(0)
    ks = jax.random.split(key, 12)
    params = {
        "in_w": 0.05 * jax.random.normal(ks[0], (3 * D, D), jnp.float32),
        "in_b": 0.05 * jax.random.normal(ks[1], (3 * D,), jnp.float32),
        "out_w": 0.05 * jax.random.normal(ks[2], (D, D), jnp.float32),
        "out_b": 0.05 * jax.random.normal(ks[3], (D,), jnp.float32),
        "w1": 0.05 * jax.random.normal(ks[4], (DFF, D), jnp.float32),
        "b1": 0.05 * jax.random.normal(ks[5], (DFF,), jnp.float32),
        "w2": 0.05 * jax.random.normal(ks[6], (D, DFF), jnp.float32),
        "b2": 0.05 * jax.random.normal(ks[7], (D,), jnp.float32),
        "ln1_g": jnp.ones((D,), jnp.float32),
        "ln1_b": jnp.zeros((D,), jnp.float32),
        "ln2_g": jnp.ones((D,), jnp.float32),
        "ln2_b": jnp.zeros((D,), jnp.float32),
    }

    src = jax.random.normal(ks[8], (S, B, D), jnp.float32)
    pos = jax.random.normal(ks[9], (S, B, D), jnp.float32)

    out = transformer_encoder_layer(src, pos, params, nhead=NHEAD)
    out = jax.block_until_ready(out)

    ref = _reference(src, pos, params, nhead=NHEAD)
    assert out.shape == (S, B, D)
    # bf16 matmuls (f32 accumulation) + approx reciprocal (+ bf16 exp on v6e/v7x)
    # -> widened tolerance vs the f32 reference.
    assert jnp.allclose(out, ref, rtol=3e-2, atol=3e-2), "mismatch vs reference"

    print("KERNEL_OK")
</pallas_src>

<mosaic_0001>
module attributes {stable_mosaic.version = 11 : i64} {
  func.func @kernel(%arg0: i32, %arg1: i32, %arg2: memref<1x16x128xf32, #tpu.memory_space<vmem>>, %arg3: memref<1x16x128xf32, #tpu.memory_space<vmem>>, %arg4: memref<128x128xbf16, #tpu.memory_space<vmem>>, %arg5: memref<128x128xbf16, #tpu.memory_space<vmem>>, %arg6: memref<128x128xbf16, #tpu.memory_space<vmem>>, %arg7: memref<128x128xbf16, #tpu.memory_space<vmem>>, %arg8: memref<128x256xbf16, #tpu.memory_space<vmem>>, %arg9: memref<256x128xbf16, #tpu.memory_space<vmem>>, %arg10: memref<1x256xf32, #tpu.memory_space<vmem>>, %arg11: memref<16x128xf32, #tpu.memory_space<vmem>>, %arg12: memref<1x16x128xf32, #tpu.memory_space<vmem>>, %arg13: memref<4x16x32xbf16, #tpu.memory_space<vmem>>, %arg14: memref<4x16x32xbf16, #tpu.memory_space<vmem>>) attributes {dimension_semantics = [#tpu.dimension_semantics<parallel>, #tpu.dimension_semantics<arbitrary>], iteration_bounds = array<i64: 2, 1>, scalar_prefetch = 0 : i64, scratch_operands = 2 : i64, tpu.core_type = #tpu.core_type<tc>, window_params = [{transform_indices = @transform_0, window_bounds = array<i64: 1, 16, 128>}, {transform_indices = @transform_1, window_bounds = array<i64: 1, 16, 128>}, {pipeline_mode = #tpu.pipeline_mode<synchronous>, transform_indices = @transform_2, window_bounds = array<i64: 128, 128>}, {pipeline_mode = #tpu.pipeline_mode<synchronous>, transform_indices = @transform_3, window_bounds = array<i64: 128, 128>}, {pipeline_mode = #tpu.pipeline_mode<synchronous>, transform_indices = @transform_4, window_bounds = array<i64: 128, 128>}, {pipeline_mode = #tpu.pipeline_mode<synchronous>, transform_indices = @transform_5, window_bounds = array<i64: 128, 128>}, {pipeline_mode = #tpu.pipeline_mode<synchronous>, transform_indices = @transform_6, window_bounds = array<i64: 128, 256>}, {pipeline_mode = #tpu.pipeline_mode<synchronous>, transform_indices = @transform_7, window_bounds = array<i64: 256, 128>}, {pipeline_mode = #tpu.pipeline_mode<synchronous>, transform_indices = @transform_8, window_bounds = array<i64: 1, 256>}, {pipeline_mode = #tpu.pipeline_mode<synchronous>, transform_indices = @transform_9, window_bounds = array<i64: 16, 128>}, {transform_indices = @transform_10, window_bounds = array<i64: 1, 16, 128>}]} {
    %c0_i32 = arith.constant 0 : i32
    %0 = arith.cmpi eq, %arg1, %c0_i32 : i32
    %1 = arith.extui %0 : i1 to i32
    %c0_i32_0 = arith.constant 0 : i32
    %2 = arith.cmpi ne, %1, %c0_i32_0 : i32
    scf.if %2 {
      %c0_49 = arith.constant 0 : index
      %c0_50 = arith.constant 0 : index
      %c0_51 = arith.constant 0 : index
      %111 = vector.load %arg2[%c0_49, %c0_50, %c0_51] : memref<1x16x128xf32, #tpu.memory_space<vmem>>, vector<1x16x128xf32>
      %112 = vector.shape_cast %111 : vector<1x16x128xf32> to vector<16x128xf32>
      %c0_52 = arith.constant 0 : index
      %c0_53 = arith.constant 0 : index
      %c0_54 = arith.constant 0 : index
      %113 = vector.load %arg3[%c0_52, %c0_53, %c0_54] : memref<1x16x128xf32, #tpu.memory_space<vmem>>, vector<1x16x128xf32>
      %114 = vector.shape_cast %113 : vector<1x16x128xf32> to vector<16x128xf32>
      %115 = arith.addf %112, %114 : vector<16x128xf32>
      %116 = arith.truncf %115 : vector<16x128xf32> to vector<16x128xbf16>
      %c0_55 = arith.constant 0 : index
      %c0_56 = arith.constant 0 : index
      %117 = vector.load %arg5[%c0_55, %c0_56] : memref<128x128xbf16, #tpu.memory_space<vmem>>, vector<128x128xbf16>
      %cst_57 = arith.constant dense<0.000000e+00> : vector<16x128xf32>
      %118 = tpu.matmul %116, %117, %cst_57 {dimension_numbers = #tpu.dot_dimension_numbers<[1], [0], [0], [1], [0, 0, 1, 1], [], []>} : vector<16x128xbf16>, vector<128x128xbf16>, vector<16x128xf32> -> vector<16x128xf32>
      %c1 = arith.constant 1 : index
      %c0_58 = arith.constant 0 : index
      %119 = vector.load %arg11[%c1, %c0_58] : memref<16x128xf32, #tpu.memory_space<vmem>>, vector<1x128xf32>
      %120 = vector.broadcast %119 : vector<1x128xf32> to vector<16x128xf32>
      %121 = arith.addf %118, %120 : vector<16x128xf32>
      %122 = arith.truncf %112 : vector<16x128xf32> to vector<16x128xbf16>
      %c0_59 = arith.constant 0 : index
      %c0_60 = arith.constant 0 : index
      %123 = vector.load %arg6[%c0_59, %c0_60] : memref<128x128xbf16, #tpu.memory_space<vmem>>, vector<128x128xbf16>
      %cst_61 = arith.constant dense<0.000000e+00> : vector<16x128xf32>
      %124 = tpu.matmul %122, %123, %cst_61 {dimension_numbers = #tpu.dot_dimension_numbers<[1], [0], [0], [1], [0, 0, 1, 1], [], []>} : vector<16x128xbf16>, vector<128x128xbf16>, vector<16x128xf32> -> vector<16x128xf32>
      %c2 = arith.constant 2 : index
      %c0_62 = arith.constant 0 : index
      %125 = vector.load %arg11[%c2, %c0_62] : memref<16x128xf32, #tpu.memory_space<vmem>>, vector<1x128xf32>
      %126 = vector.broadcast %125 : vector<1x128xf32> to vector<16x128xf32>
      %127 = arith.addf %124, %126 : vector<16x128xf32>
      %128 = vector.shape_cast %121 : vector<16x128xf32> to vector<16x4x32xf32>
      %129 = tpu.transpose %128, [1, 0, 2] : vector<16x4x32xf32> -> vector<4x16x32xf32>
      %130 = arith.truncf %129 : vector<4x16x32xf32> to vector<4x16x32xbf16>
      %c0_63 = arith.constant 0 : index
      %c0_64 = arith.constant 0 : index
      %c0_65 = arith.constant 0 : index
      %131 = vector.load %arg13[%c0_63, %c0_64, %c0_65] : memref<4x16x32xbf16, #tpu.memory_space<vmem>>, vector<4x16x32xbf16>
      tpu.vector_store %arg13[%c0_63, %c0_64, %c0_65], %130 {strides = array<i32>} : memref<4x16x32xbf16, #tpu.memory_space<vmem>>, vector<4x16x32xbf16>,
      %132 = vector.shape_cast %127 : vector<16x128xf32> to vector<16x4x32xf32>
      %133 = tpu.transpose %132, [1, 0, 2] : vector<16x4x32xf32> -> vector<4x16x32xf32>
      %134 = arith.truncf %133 : vector<4x16x32xf32> to vector<4x16x32xbf16>
      %c0_66 = arith.constant 0 : index
      %c0_67 = arith.constant 0 : index
      %c0_68 = arith.constant 0 : index
      %135 = vector.load %arg14[%c0_66, %c0_67, %c0_68] : memref<4x16x32xbf16, #tpu.memory_space<vmem>>, vector<4x16x32xbf16>
      tpu.vector_store %arg14[%c0_66, %c0_67, %c0_68], %134 {strides = array<i32>} : memref<4x16x32xbf16, #tpu.memory_space<vmem>>, vector<4x16x32xbf16>,
    } else {
    }
    %c16_i32 = arith.constant 16 : i32
    %3 = arith.muli %arg1, %c16_i32 : i32
    %4 = tpu.assume_multiple %3, 16 : i32
    %c0 = arith.constant 0 : index
    %5 = arith.index_cast %4 : i32 to index
    %c0_1 = arith.constant 0 : index
    %6 = vector.load %arg2[%c0, %5, %c0_1] : memref<1x16x128xf32, #tpu.memory_space<vmem>>, vector<1x16x128xf32>
    %7 = vector.shape_cast %6 : vector<1x16x128xf32> to vector<16x128xf32>
    %c0_2 = arith.constant 0 : index
    %8 = arith.index_cast %4 : i32 to index
    %c0_3 = arith.constant 0 : index
    %9 = vector.load %arg3[%c0_2, %8, %c0_3] : memref<1x16x128xf32, #tpu.memory_space<vmem>>, vector<1x16x128xf32>
    %10 = vector.shape_cast %9 : vector<1x16x128xf32> to vector<16x128xf32>
    %11 = arith.addf %7, %10 : vector<16x128xf32>
    %12 = arith.truncf %11 : vector<16x128xf32> to vector<16x128xbf16>
    %c0_4 = arith.constant 0 : index
    %c0_5 = arith.constant 0 : index
    %13 = vector.load %arg4[%c0_4, %c0_5] : memref<128x128xbf16, #tpu.memory_space<vmem>>, vector<128x128xbf16>
    %cst = arith.constant dense<0.000000e+00> : vector<16x128xf32>
    %14 = tpu.matmul %12, %13, %cst {dimension_numbers = #tpu.dot_dimension_numbers<[1], [0], [0], [1], [0, 0, 1, 1], [], []>} : vector<16x128xbf16>, vector<128x128xbf16>, vector<16x128xf32> -> vector<16x128xf32>
    %c0_6 = arith.constant 0 : index
    %c0_7 = arith.constant 0 : index
    %15 = vector.load %arg11[%c0_6, %c0_7] : memref<16x128xf32, #tpu.memory_space<vmem>>, vector<1x128xf32>
    %16 = vector.broadcast %15 : vector<1x128xf32> to vector<16x128xf32>
    %17 = arith.addf %14, %16 : vector<16x128xf32>
    %18 = vector.shape_cast %17 : vector<16x128xf32> to vector<16x4x32xf32>
    %19 = tpu.transpose %18, [1, 0, 2] : vector<16x4x32xf32> -> vector<4x16x32xf32>
    %20 = arith.truncf %19 : vector<4x16x32xf32> to vector<4x16x32xbf16>
    %c0_8 = arith.constant 0 : index
    %c0_9 = arith.constant 0 : index
    %c0_10 = arith.constant 0 : index
    %21 = vector.load %arg13[%c0_8, %c0_9, %c0_10] : memref<4x16x32xbf16, #tpu.memory_space<vmem>>, vector<4x16x32xbf16>
    "tpu.trace_start"() <{level = 10 : i32, message = "hqe,hke->hqk"}> : () -> ()
    %cst_11 = arith.constant dense<0.000000e+00> : vector<4x16x16xf32>
    %22 = tpu.matmul %20, %21, %cst_11 {dimension_numbers = #tpu.dot_dimension_numbers<[2], [2], [1], [1], [0, 0, 0, 1, 1, 1], [0], [0]>} : vector<4x16x32xbf16>, vector<4x16x32xbf16>, vector<4x16x16xf32> -> vector<4x16x16xf32>
    "tpu.trace_stop"() : () -> ()
    %cst_12 = arith.constant dense<0xFF800000> : vector<4x16xf32>
    %23 = vector.multi_reduction <maximumf>, %22, %cst_12 [2] : vector<4x16x16xf32> to vector<4x16xf32>
    %24 = vector.shape_cast %23 : vector<4x16xf32> to vector<4x16x1xf32>
    %25 = vector.broadcast %24 : vector<4x16x1xf32> to vector<4x16x16xf32>
    %26 = arith.subf %22, %25 : vector<4x16x16xf32>
    %27 = math.exp %26 : vector<4x16x16xf32>
    %cst_13 = arith.constant dense<0.000000e+00> : vector<4x16xf32>
    %28 = vector.multi_reduction <add>, %27, %cst_13 [2] : vector<4x16x16xf32> to vector<4x16xf32>
    %29 = vector.shape_cast %28 : vector<4x16xf32> to vector<4x16x1xf32>
    %30 = tpu.reciprocal %29 {approx = true} : vector<4x16x1xf32> -> vector<4x16x1xf32>
    %31 = vector.broadcast %30 : vector<4x16x1xf32> to vector<4x16x16xf32>
    %32 = arith.mulf %27, %31 : vector<4x16x16xf32>
    %33 = arith.truncf %32 : vector<4x16x16xf32> to vector<4x16x16xbf16>
    %c0_14 = arith.constant 0 : index
    %c0_15 = arith.constant 0 : index
    %c0_16 = arith.constant 0 : index
    %34 = vector.load %arg14[%c0_14, %c0_15, %c0_16] : memref<4x16x32xbf16, #tpu.memory_space<vmem>>, vector<4x16x32xbf16>
    "tpu.trace_start"() <{level = 10 : i32, message = "hqk,hke->hqe"}> : () -> ()
    %cst_17 = arith.constant dense<0.000000e+00> : vector<4x16x32xf32>
    %35 = tpu.matmul %33, %34, %cst_17 {dimension_numbers = #tpu.dot_dimension_numbers<[2], [1], [1], [2], [0, 0, 0, 1, 1, 2], [0], [0]>} : vector<4x16x16xbf16>, vector<4x16x32xbf16>, vector<4x16x32xf32> -> vector<4x16x32xf32>
    "tpu.trace_stop"() : () -> ()
    %36 = tpu.transpose %35, [1, 0, 2] : vector<4x16x32xf32> -> vector<16x4x32xf32>
    %37 = vector.shape_cast %36 : vector<16x4x32xf32> to vector<16x128xf32>
    %38 = arith.truncf %37 : vector<16x128xf32> to vector<16x128xbf16>
    %c0_18 = arith.constant 0 : index
    %c0_19 = arith.constant 0 : index
    %39 = vector.load %arg7[%c0_18, %c0_19] : memref<128x128xbf16, #tpu.memory_space<vmem>>, vector<128x128xbf16>
    %cst_20 = arith.constant dense<0.000000e+00> : vector<16x128xf32>
    %40 = tpu.matmul %38, %39, %cst_20 {dimension_numbers = #tpu.dot_dimension_numbers<[1], [0], [0], [1], [0, 0, 1, 1], [], []>} : vector<16x128xbf16>, vector<128x128xbf16>, vector<16x128xf32> -> vector<16x128xf32>
    %c3 = arith.constant 3 : index
    %c0_21 = arith.constant 0 : index
    %41 = vector.load %arg11[%c3, %c0_21] : memref<16x128xf32, #tpu.memory_space<vmem>>, vector<1x128xf32>
    %42 = vector.broadcast %41 : vector<1x128xf32> to vector<16x128xf32>
    %43 = arith.addf %40, %42 : vector<16x128xf32>
    %44 = arith.addf %7, %43 : vector<16x128xf32>
    %c5 = arith.constant 5 : index
    %c0_22 = arith.constant 0 : index
    %45 = vector.load %arg11[%c5, %c0_22] : memref<16x128xf32, #tpu.memory_space<vmem>>, vector<1x128xf32>
    %c6 = arith.constant 6 : index
    %c0_23 = arith.constant 0 : index
    %46 = vector.load %arg11[%c6, %c0_23] : memref<16x128xf32, #tpu.memory_space<vmem>>, vector<1x128xf32>
    %cst_24 = arith.constant dense<0.000000e+00> : vector<16xf32>
    %47 = vector.multi_reduction <add>, %44, %cst_24 [1] : vector<16x128xf32> to vector<16xf32>
    %48 = vector.shape_cast %47 : vector<16xf32> to vector<16x1xf32>
    %cst_25 = arith.constant 1.280000e+02 : f32
    %49 = vector.broadcast %cst_25 : f32 to vector<16x1xf32>
    %50 = arith.divf %48, %49 : vector<16x1xf32>
    %51 = vector.broadcast %50 : vector<16x1xf32> to vector<16x128xf32>
    %52 = arith.subf %44, %51 : vector<16x128xf32>
    %53 = arith.mulf %52, %52 : vector<16x128xf32>
    %cst_26 = arith.constant dense<0.000000e+00> : vector<16xf32>
    %54 = vector.multi_reduction <add>, %53, %cst_26 [1] : vector<16x128xf32> to vector<16xf32>
    %55 = vector.shape_cast %54 : vector<16xf32> to vector<16x1xf32>
    %cst_27 = arith.constant 1.280000e+02 : f32
    %56 = vector.broadcast %cst_27 : f32 to vector<16x1xf32>
    %57 = arith.divf %55, %56 : vector<16x1xf32>
    %58 = vector.broadcast %50 : vector<16x1xf32> to vector<16x128xf32>
    %59 = arith.subf %44, %58 : vector<16x128xf32>
    %cst_28 = arith.constant 9.99999974E-6 : f32
    %60 = vector.broadcast %cst_28 : f32 to vector<16x1xf32>
    %61 = arith.addf %57, %60 : vector<16x1xf32>
    %62 = math.rsqrt %61 : vector<16x1xf32>
    %63 = vector.broadcast %62 : vector<16x1xf32> to vector<16x128xf32>
    %64 = arith.mulf %59, %63 : vector<16x128xf32>
    %65 = vector.broadcast %45 : vector<1x128xf32> to vector<16x128xf32>
    %66 = arith.mulf %64, %65 : vector<16x128xf32>
    %67 = vector.broadcast %46 : vector<1x128xf32> to vector<16x128xf32>
    %68 = arith.addf %66, %67 : vector<16x128xf32>
    %69 = arith.truncf %68 : vector<16x128xf32> to vector<16x128xbf16>
    %c0_29 = arith.constant 0 : index
    %c0_30 = arith.constant 0 : index
    %70 = vector.load %arg8[%c0_29, %c0_30] : memref<128x256xbf16, #tpu.memory_space<vmem>>, vector<128x256xbf16>
    %cst_31 = arith.constant dense<0.000000e+00> : vector<16x256xf32>
    %71 = tpu.matmul %69, %70, %cst_31 {dimension_numbers = #tpu.dot_dimension_numbers<[1], [0], [0], [1], [0, 0, 1, 1], [], []>} : vector<16x128xbf16>, vector<128x256xbf16>, vector<16x256xf32> -> vector<16x256xf32>
    %c0_32 = arith.constant 0 : index
    %c0_33 = arith.constant 0 : index
    %72 = vector.load %arg10[%c0_32, %c0_33] : memref<1x256xf32, #tpu.memory_space<vmem>>, vector<1x256xf32>
    %73 = vector.broadcast %72 : vector<1x256xf32> to vector<16x256xf32>
    %74 = arith.addf %71, %73 : vector<16x256xf32>
    %cst_34 = arith.constant 0.000000e+00 : f32
    %75 = vector.broadcast %cst_34 : f32 to vector<16x256xf32>
    %76 = arith.maximumf %74, %75 : vector<16x256xf32>
    %77 = arith.truncf %76 : vector<16x256xf32> to vector<16x256xbf16>
    %c0_35 = arith.constant 0 : index
    %c0_36 = arith.constant 0 : index
    %78 = vector.load %arg9[%c0_35, %c0_36] : memref<256x128xbf16, #tpu.memory_space<vmem>>, vector<256x128xbf16>
    %cst_37 = arith.constant dense<0.000000e+00> : vector<16x128xf32>
    %79 = tpu.matmul %77, %78, %cst_37 {dimension_numbers = #tpu.dot_dimension_numbers<[1], [0], [0], [1], [0, 0, 1, 1], [], []>} : vector<16x256xbf16>, vector<256x128xbf16>, vector<16x128xf32> -> vector<16x128xf32>
    %c4 = arith.constant 4 : index
    %c0_38 = arith.constant 0 : index
    %80 = vector.load %arg11[%c4, %c0_38] : memref<16x128xf32, #tpu.memory_space<vmem>>, vector<1x128xf32>
    %81 = vector.broadcast %80 : vector<1x128xf32> to vector<16x128xf32>
    %82 = arith.addf %79, %81 : vector<16x128xf32>
    %83 = arith.addf %68, %82 : vector<16x128xf32>
    %c7 = arith.constant 7 : index
    %c0_39 = arith.constant 0 : index
    %84 = vector.load %arg11[%c7, %c0_39] : memref<16x128xf32, #tpu.memory_space<vmem>>, vector<1x128xf32>
    %c8 = arith.constant 8 : index
    %c0_40 = arith.constant 0 : index
    %85 = vector.load %arg11[%c8, %c0_40] : memref<16x128xf32, #tpu.memory_space<vmem>>, vector<1x128xf32>
    %cst_41 = arith.constant dense<0.000000e+00> : vector<16xf32>
    %86 = vector.multi_reduction <add>, %83, %cst_41 [1] : vector<16x128xf32> to vector<16xf32>
    %87 = vector.shape_cast %86 : vector<16xf32> to vector<16x1xf32>
    %cst_42 = arith.constant 1.280000e+02 : f32
    %88 = vector.broadcast %cst_42 : f32 to vector<16x1xf32>
    %89 = arith.divf %87, %88 : vector<16x1xf32>
    %90 = vector.broadcast %89 : vector<16x1xf32> to vector<16x128xf32>
    %91 = arith.subf %83, %90 : vector<16x128xf32>
    %92 = arith.mulf %91, %91 : vector<16x128xf32>
    %cst_43 = arith.constant dense<0.000000e+00> : vector<16xf32>
    %93 = vector.multi_reduction <add>, %92, %cst_43 [1] : vector<16x128xf32> to vector<16xf32>
    %94 = vector.shape_cast %93 : vector<16xf32> to vector<16x1xf32>
    %cst_44 = arith.constant 1.280000e+02 : f32
    %95 = vector.broadcast %cst_44 : f32 to vector<16x1xf32>
    %96 = arith.divf %94, %95 : vector<16x1xf32>
    %97 = vector.broadcast %89 : vector<16x1xf32> to vector<16x128xf32>
    %98 = arith.subf %83, %97 : vector<16x128xf32>
    %cst_45 = arith.constant 9.99999974E-6 : f32
    %99 = vector.broadcast %cst_45 : f32 to vector<16x1xf32>
    %100 = arith.addf %96, %99 : vector<16x1xf32>
    %101 = math.rsqrt %100 : vector<16x1xf32>
    %102 = vector.broadcast %101 : vector<16x1xf32> to vector<16x128xf32>
    %103 = arith.mulf %98, %102 : vector<16x128xf32>
    %104 = vector.broadcast %84 : vector<1x128xf32> to vector<16x128xf32>
    %105 = arith.mulf %103, %104 : vector<16x128xf32>
    %106 = vector.broadcast %85 : vector<1x128xf32> to vector<16x128xf32>
    %107 = arith.addf %105, %106 : vector<16x128xf32>
    %c0_46 = arith.constant 0 : index
    %c0_47 = arith.constant 0 : index
    %c0_48 = arith.constant 0 : index
    %108 = vector.load %arg12[%c0_46, %c0_47, %c0_48] : memref<1x16x128xf32, #tpu.memory_space<vmem>>, vector<1x16x128xf32>
    %109 = vector.shape_cast %108 : vector<1x16x128xf32> to vector<16x128xf32>
    %110 = vector.shape_cast %107 : vector<16x128xf32> to vector<1x16x128xf32>
    tpu.vector_store %arg12[%c0_46, %c0_47, %c0_48], %110 {strides = array<i32>} : memref<1x16x128xf32, #tpu.memory_space<vmem>>, vector<1x16x128xf32>,
    return
  }
  func.func @transform_0(%arg0: i32, %arg1: i32) -> (i32, i32, i32) {
    %c0_i32 = arith.constant 0 : i32
    %c0_i32_0 = arith.constant 0 : i32
    %c0_i32_1 = arith.constant 0 : i32
    return %arg0, %c0_i32, %c0_i32_0 : i32, i32, i32
  }
  func.func @transform_1(%arg0: i32, %arg1: i32) -> (i32, i32, i32) {
    %c0_i32 = arith.constant 0 : i32
    %c0_i32_0 = arith.constant 0 : i32
    %c0_i32_1 = arith.constant 0 : i32
    return %arg0, %c0_i32, %c0_i32_0 : i32, i32, i32
  }
  func.func @transform_2(%arg0: i32, %arg1: i32) -> (i32, i32) {
    %c0_i32 = arith.constant 0 : i32
    %c0_i32_0 = arith.constant 0 : i32
    %c0_i32_1 = arith.constant 0 : i32
    return %c0_i32, %c0_i32_0 : i32, i32
  }
  func.func @transform_3(%arg0: i32, %arg1: i32) -> (i32, i32) {
    %c0_i32 = arith.constant 0 : i32
    %c0_i32_0 = arith.constant 0 : i32
    %c0_i32_1 = arith.constant 0 : i32
    return %c0_i32, %c0_i32_0 : i32, i32
  }
  func.func @transform_4(%arg0: i32, %arg1: i32) -> (i32, i32) {
    %c0_i32 = arith.constant 0 : i32
    %c0_i32_0 = arith.constant 0 : i32
    %c0_i32_1 = arith.constant 0 : i32
    return %c0_i32, %c0_i32_0 : i32, i32
  }
  func.func @transform_5(%arg0: i32, %arg1: i32) -> (i32, i32) {
    %c0_i32 = arith.constant 0 : i32
    %c0_i32_0 = arith.constant 0 : i32
    %c0_i32_1 = arith.constant 0 : i32
    return %c0_i32, %c0_i32_0 : i32, i32
  }
  func.func @transform_6(%arg0: i32, %arg1: i32) -> (i32, i32) {
    %c0_i32 = arith.constant 0 : i32
    %c0_i32_0 = arith.constant 0 : i32
    %c0_i32_1 = arith.constant 0 : i32
    return %c0_i32, %c0_i32_0 : i32, i32
  }
  func.func @transform_7(%arg0: i32, %arg1: i32) -> (i32, i32) {
    %c0_i32 = arith.constant 0 : i32
    %c0_i32_0 = arith.constant 0 : i32
    %c0_i32_1 = arith.constant 0 : i32
    return %c0_i32, %c0_i32_0 : i32, i32
  }
  func.func @transform_8(%arg0: i32, %arg1: i32) -> (i32, i32) {
    %c0_i32 = arith.constant 0 : i32
    %c0_i32_0 = arith.constant 0 : i32
    %c0_i32_1 = arith.constant 0 : i32
    return %c0_i32, %c0_i32_0 : i32, i32
  }
  func.func @transform_9(%arg0: i32, %arg1: i32) -> (i32, i32) {
    %c0_i32 = arith.constant 0 : i32
    %c0_i32_0 = arith.constant 0 : i32
    %c0_i32_1 = arith.constant 0 : i32
    return %c0_i32, %c0_i32_0 : i32, i32
  }
  func.func @transform_10(%arg0: i32, %arg1: i32) -> (i32, i32, i32) {
    %c0_i32 = arith.constant 0 : i32
    %c0_i32_0 = arith.constant 0 : i32
    return %arg0, %arg1, %c0_i32 : i32, i32, i32
  }
}

</mosaic_0001>

<bundles_post_ra>
// kernel: tpu_custom_call.1
= control target key start
LH: loop header
LB: loop body
LE: loop exit
PB: predicated region body
PF: predicated region fallthrough
CT: control target
= control target key end

     0   :  { %s5058_s0 = inlined_call_operand.hbm [shape: f32[2,16,128], index: 0, kind: input, shape index: {}]   ;;  %s5059_s1 = inlined_call_operand.hbm [shape: f32[2,16,128], index: 1, kind: input, shape index: {}]   ;;  %s5060_s2 = inlined_call_operand.hbm [shape: bf16[128,128], index: 2, kind: input, shape index: {}]   ;;  %s5061_s3 = inlined_call_operand.hbm [shape: bf16[128,128], index: 3, kind: input, shape index: {}]   ;;  %s5062_s4 = inlined_call_operand.hbm [shape: bf16[128,128], index: 4, kind: input, shape index: {}]   ;;  %s5063_s5 = inlined_call_operand.hbm [shape: bf16[128,128], index: 5, kind: input, shape index: {}]   ;;  %s5064_s6 = inlined_call_operand.hbm [shape: bf16[128,256], index: 6, kind: input, shape index: {}]   ;;  %s5065_s7 = inlined_call_operand.hbm [shape: bf16[256,128], index: 7, kind: input, shape index: {}]   ;;  %s5066_s8 = inlined_call_operand.vmem [shape: f32[1,256], index: 8, kind: input, shape index: {}]   ;;  %s5067_s9 = inlined_call_operand.vmem [shape: f32[16,128], index: 9, kind: input, shape index: {}]   ;;  %s5068_s10 = inlined_call_operand.hbm [shape: f32[2,16,128], index: 10, kind: output, shape index: {}]  }
   0x1   :  { %5079 = sst [smem:[#allocation27_spill]] %s5058_s0 }
   0x2   :  { %5080 = sst [smem:[#allocation28_spill]] %s5060_s2 }
   0x3   :  { %5081 = sst [smem:[#allocation29_spill]] %s5061_s3 }
   0x4   :  { %5082 = sst [smem:[#allocation30_spill]] %s5062_s4 }
   0x5   :  { %5083 = sst [smem:[#allocation31_spill]] %s5063_s5 }
   0x6   :  { %5084 = sst [smem:[#allocation32_spill]] %s5064_s6 }
   0x7   :  { %5085 = sst [smem:[#allocation33_spill]] %s5065_s7 }
   0x8   :  { %5086 = sst [smem:[#allocation34_spill]] %s5066_s8 }
   0x9   :  { %5087 = sst [smem:[#allocation35_spill]] %s5067_s9 }
   0xa   :  { %5088 = sst [smem:[#allocation36_spill]] %s5068_s10 }
   0xb   :  { %15 = vsyncpa [#allocation5], 0 }
   0xc   :  { %17 = vsyncpa [#allocation5 + $0x1], 0 }
   0xd   :  { %18 = vsyncpa [#allocation8], 0 }
   0xe   :  { %20 = vsyncpa [#allocation8 + $0x1], 0 }
   0xf   :  { %21 = vsyncpa [#allocation11], 0 }
  0x10   :  { %22 = vsyncpa [#allocation14], 0 }
  0x11   :  { %23 = vsyncpa [#allocation17], 0 }
  0x12   :  { %24 = vsyncpa [#allocation6], 0 }
  0x13   :  { %26 = vsyncpa [#allocation6 + $0x1], 0  ;;  %s4260_s13 = smov 0   ;;  %s4262_s14 = smov 0  }
  0x14   :  { %s4264_s15 = smov 0   ;;  %s4266_s16 = smov 0  }
  0x15   :  { %s4268_s17 = smov 0   ;;  %s4270_s18 = smov 0  }
  0x16 LB: > { %5089 = sst [smem:[#allocation26_spill]] %s4172_s16  ;;  %s4291_s19 = sadd.s32 4294967295, %s4180_s18   ;;  %s4180_s18 = sphi %s4270_s18, %s32_s18   ;;  %s4176_s17 = sphi %s4268_s17, %s5129_s17   ;;  %s4172_s16 = sphi %s4266_s16, %s5128_s16   ;;  %s4168_s15 = sphi %s4264_s15, %s5127_s15   ;;  %s4164_s14 = sphi %s4262_s14, %s5126_s14   ;;  %s4160_s13 = sphi %s4260_s13, %s5125_s13  }
  0x17   : > { %p3248_p0 = scmp.ge.s32.totalorder %s4180_s18, 1  ;;  %p5071_p1 = scmp.eq.s32.totalorder %s4291_s19, 0 }
  0x18   : > { %p297_p2 = scmp.lt.s32.totalorder %s4180_s18, 3  ;;  %s4182_s21 = smov [#allocation9]  }
  0x19   : > { %s309_s22 = sshll.u32 %s4182_s21, 4  ;;  %s4183_s24 = smov [#allocation10]   ;;  %s4300_s22 = int_to_ptr.vmem [resolvable:$true] %s309_s22 }
  0x1a   : > { %p4296_p3 = pnand %p3248_p0, %p297_p2  ;;  %s322_s25 = sshll.u32 %s4183_s24, 4  ;;  %s4311_s25 = int_to_ptr.vmem [resolvable:$true] %s322_s25 }
  0x1b   : > { %s4184_s26 = smov [#allocation13]   ;;  %s5092_s2 = sld [smem:[#allocation28_spill]] }
  0x1c   : > { %s5090_s20 = scalar_select %p4296_p3, 1, 0 }
  0x1d   : > { %p3609_p4 = pneg %p4296_p3  ;;  %s4313_s27 = sshll.u32 %s4184_s26, 4  ;;  %s349_s27 = int_to_ptr.vmem [resolvable:$true] %s4313_s27 }
  0x1f   : > { %p4307_p6 = pnand %p3609_p4, %p5071_p1 }
  0x21   : > { %s3850_s30 = scalar_lea.hbm %s5092_s2, 1024  ;;  %p4323_p8 = pneg %p4307_p6 }
  0x22   : > { %p3851_p7 = scmp.ne.s32.totalorder %s5092_s2, %s3850_s30  ;;  %p3857_p11 = scmp.lt.u32.totalorder %s3850_s30, %s5092_s2 }
  0x24   : > { %p3853_p9 = pnand %p4323_p8, %p3851_p7 }
  0x26   : > { %p3854_p10 = pneg %p3853_p9 }
  0x28   : > { %p3859_p12 = pnand %p3857_p11, %p3854_p10 }
  0x2a   : > { %3862 = shalt.err (!%p3859_p12)
}
  0x2b   : > { %s3863_s28 = scalar_lea.vmem %s4300_s22, 1024  ;;  %p3871_p4 = scmp.lt.s32.totalorder %s4300_s22, %s4300_s22 }
  0x2c   : > { %p3864_p13 = scmp.ne.s32.totalorder %s4300_s22, %s3863_s28  ;;  %p3872_p5 = scmp.lt.s32.totalorder %s3863_s28, %s3863_s28 }
  0x2e   : > { %p3866_p0 = pnand %p3864_p13, %p4323_p8  ;;  %p3873_p7 = por %p3872_p5, %p3871_p4 }
  0x30   : > { %p3867_p2 = pneg %p3866_p0 }
  0x32   : > { %p3874_p9 = pnand %p3873_p7, %p3867_p2 }
  0x34   : > { %3877 = shalt.err (!%p3874_p9)
}
  0x35   : > { %s5073_s29 = smov 64   ;;  %s4186_s30 = smov 4  }
  0x36   : > { %3612 = dma.hbm_to_vmem [thread:$0]  (!%p4307_p6), %s5092_s2, 1024, %s4300_s22, [#allocation8], %s5073_s29, %s5073_s29, %s4186_s30  }
  0x37   : > { %s5094_s3 = sld [smem:[#allocation29_spill]] }
  0x3d   : > { %s3878_s28 = scalar_lea.hbm %s5094_s3, 1024 }
  0x3e   : > { %p3879_p5 = scmp.ne.s32.totalorder %s5094_s3, %s3878_s28  ;;  %p3885_p12 = scmp.lt.u32.totalorder %s3878_s28, %s5094_s3 }
  0x40   : > { %p3881_p10 = pnand %p3879_p5, %p4323_p8 }
  0x42   : > { %p3882_p11 = pneg %p3881_p10 }
  0x44   : > { %p3887_p13 = pnand %p3885_p12, %p3882_p11 }
  0x46   : > { %3890 = shalt.err (!%p3887_p13)
}
  0x47   : > { %s3891_s22 = scalar_lea.vmem %s4311_s25, 1024  ;;  %p3899_p7 = scmp.lt.s32.totalorder %s4311_s25, %s4311_s25 }
  0x48   : > { %p3892_p0 = scmp.ne.s32.totalorder %s4311_s25, %s3891_s22  ;;  %p3900_p9 = scmp.lt.s32.totalorder %s3891_s22, %s3891_s22 }
  0x4a   : > { %p3894_p2 = pnand %p3892_p0, %p4323_p8  ;;  %p3901_p5 = por %p3900_p9, %p3899_p7 }
  0x4c   : > { %p3895_p4 = pneg %p3894_p2 }
  0x4e   : > { %p3902_p10 = pnand %p3901_p5, %p3895_p4 }
  0x50   : > { %3905 = shalt.err (!%p3902_p10)
}
  0x51   : > { %3615 = dma.hbm_to_vmem [thread:$0]  (!%p4307_p6), %s5094_s3, 1024, %s4311_s25, [#allocation11], %s5073_s29, %s5073_s29, %s4186_s30  }
  0x52   : > { %s5095_s5 = sld [smem:[#allocation31_spill]] }
  0x58   : > { %s3906_s11 = scalar_lea.hbm %s5095_s5, 1024 }
  0x59   : > { %p3907_p11 = scmp.ne.s32.totalorder %s5095_s5, %s3906_s11  ;;  %p3913_p0 = scmp.lt.u32.totalorder %s3906_s11, %s5095_s5 }
  0x5b   : > { %p3909_p12 = pnand %p3907_p11, %p4323_p8 }
  0x5d   : > { %p3910_p13 = pneg %p3909_p12 }
  0x5f   : > { %p3915_p2 = pnand %p3913_p0, %p3910_p13 }
  0x61   : > { %3918 = shalt.err (!%p3915_p2)
}
  0x62   : > { %s3919_s22 = scalar_lea.vmem %s349_s27, 1024  ;;  %p3927_p5 = scmp.lt.s32.totalorder %s349_s27, %s349_s27 }
  0x63   : > { %p3920_p4 = scmp.ne.s32.totalorder %s349_s27, %s3919_s22  ;;  %p3928_p10 = scmp.lt.s32.totalorder %s3919_s22, %s3919_s22 }
  0x65   : > { %p3922_p7 = pnand %p3920_p4, %p4323_p8  ;;  %p3929_p1 = por %p3928_p10, %p3927_p5 }
  0x67   : > { %p3923_p9 = pneg %p3922_p7 }
  0x69   : > { %p3930_p3 = pnand %p3929_p1, %p3923_p9 }
  0x6b   : > { %3933 = shalt.err (!%p3930_p3)
}
  0x6c   : > { %3621 = dma.hbm_to_vmem [thread:$0]  (!%p4307_p6), %s5095_s5, 1024, %s349_s27, [#allocation14], %s5073_s29, %s5073_s29, %s4186_s30  }
  0x6d   : > { %s4187_s9 = smov [#allocation12]   ;;  %s4188_s16 = smov [#allocation15]  }
  0x6e   : > { %s335_s10 = sshll.u32 %s4187_s9, 4  ;;  %s361_s11 = sshll.u32 %s4188_s16, 4  ;;  %s336_s10 = int_to_ptr.vmem [resolvable:$true] %s335_s10  ;;  %s362_s11 = int_to_ptr.vmem [resolvable:$true] %s361_s11 }
  0x6f   : > { %s5096_s4 = sld [smem:[#allocation30_spill]] }
  0x75   : > { %s3934_s26 = scalar_lea.hbm %s5096_s4, 1024 }
  0x76   : > { %p3935_p1 = scmp.ne.s32.totalorder %s5096_s4, %s3934_s26  ;;  %p3941_p12 = scmp.lt.u32.totalorder %s3934_s26, %s5096_s4 }
  0x78   : > { %p3937_p3 = pnand %p3935_p1, %p4323_p8 }
  0x7a   : > { %p3938_p11 = pneg %p3937_p3 }
  0x7c   : > { %p3943_p13 = pnand %p3941_p12, %p3938_p11 }
  0x7e   : > { %3946 = shalt.err (!%p3943_p13)
}
  0x7f   : > { %s3947_s27 = scalar_lea.vmem %s336_s10, 1024  ;;  %p3955_p7 = scmp.lt.s32.totalorder %s336_s10, %s336_s10 }
  0x80   : > { %p3948_p0 = scmp.ne.s32.totalorder %s336_s10, %s3947_s27  ;;  %p3956_p9 = scmp.lt.s32.totalorder %s3947_s27, %s3947_s27 }
  0x82   : > { %p3950_p2 = pnand %p3948_p0, %p4323_p8  ;;  %p3957_p5 = por %p3956_p9, %p3955_p7 }
  0x84   : > { %p3951_p4 = pneg %p3950_p2 }
  0x86   : > { %p3958_p10 = pnand %p3957_p5, %p3951_p4 }
  0x88   : > { %3961 = shalt.err (!%p3958_p10)
}
  0x89   : > { %3618 = dma.hbm_to_vmem [thread:$0]  (!%p4307_p6), %s5096_s4, 1024, %s336_s10, [#allocation11], %s5073_s29, %s5073_s29, %s4186_s30  }
  0x8a   : > { %s5097_s6 = sld [smem:[#allocation32_spill]] }
  0x90   : > { %s3962_s12 = scalar_lea.hbm %s5097_s6, 2048 }
  0x91   : > { %p3963_p1 = scmp.ne.s32.totalorder %s5097_s6, %s3962_s12  ;;  %p3969_p12 = scmp.lt.u32.totalorder %s3962_s12, %s5097_s6 }
  0x93   : > { %p3965_p3 = pnand %p3963_p1, %p4323_p8 }
  0x95   : > { %p3966_p11 = pneg %p3965_p3 }
  0x97   : > { %p3971_p13 = pnand %p3969_p12, %p3966_p11 }
  0x99   : > { %3974 = shalt.err (!%p3971_p13)
}
  0x9a   : > { %s3975_s25 = scalar_lea.vmem %s362_s11, 2048  ;;  %p3983_p7 = scmp.lt.s32.totalorder %s362_s11, %s362_s11 }
  0x9b   : > { %p3976_p0 = scmp.ne.s32.totalorder %s362_s11, %s3975_s25  ;;  %p3984_p9 = scmp.lt.s32.totalorder %s3975_s25, %s3975_s25 }
  0x9d   : > { %p3978_p2 = pnand %p3976_p0, %p4323_p8  ;;  %p3985_p5 = por %p3984_p9, %p3983_p7 }
  0x9f   : > { %p3979_p4 = pneg %p3978_p2 }
  0xa1   : > { %p3986_p10 = pnand %p3985_p5, %p3979_p4 }
  0xa3   : > { %3989 = shalt.err (!%p3986_p10)
}
  0xa4   : > { %s5074_s10 = smov 128   ;;  %s5076_s27 = smov 8  }
  0xa5   : > { %3624 = dma.hbm_to_vmem [thread:$0]  (!%p4307_p6), %s5097_s6, 2048, %s362_s11, [#allocation14], %s5074_s10, %s5074_s10, %s5076_s27  }
  0xa6   : > { %s4191_s9 = smov [#allocation16]   ;;  %s5098_s7 = sld [smem:[#allocation33_spill]] }
  0xa7   : > { %s374_s16 = sshll.u32 %s4191_s9, 4  ;;  %s375_s16 = int_to_ptr.vmem [resolvable:$true] %s374_s16 }
  0xac   : > { %s3990_s26 = scalar_lea.hbm %s5098_s7, 2048 }
  0xad   : > { %p3991_p1 = scmp.ne.s32.totalorder %s5098_s7, %s3990_s26  ;;  %p3997_p12 = scmp.lt.u32.totalorder %s3990_s26, %s5098_s7 }
  0xaf   : > { %p3993_p3 = pnand %p3991_p1, %p4323_p8 }
  0xb1   : > { %p3994_p11 = pneg %p3993_p3 }
  0xb3   : > { %p3999_p13 = pnand %p3997_p12, %p3994_p11 }
  0xb5   : > { %4002 = shalt.err (!%p3999_p13)
}
  0xb6   : > { %s4003_s11 = scalar_lea.vmem %s375_s16, 2048  ;;  %p4011_p7 = scmp.lt.s32.totalorder %s375_s16, %s375_s16 }
  0xb7   : > { %p4004_p0 = scmp.ne.s32.totalorder %s375_s16, %s4003_s11  ;;  %p4012_p9 = scmp.lt.s32.totalorder %s4003_s11, %s4003_s11 }
  0xb9   : > { %p4006_p2 = pnand %p4004_p0, %p4323_p8  ;;  %p4013_p5 = por %p4012_p9, %p4011_p7 }
  0xbb   : > { %p4007_p4 = pneg %p4006_p2 }
  0xbd   : > { %p4014_p10 = pnand %p4013_p5, %p4007_p4 }
  0xbf   : > { %4017 = shalt.err (!%p4014_p10)
}
  0xc0   : > { %s5099_s2 = smov 64   ;;  %s3247_s23 = sadd.s32 4294967294, %s4180_s18  }
  0xc1   : > { %3627 = dma.hbm_to_vmem [thread:$0]  (!%p4307_p6), %s5098_s7, 2048, %s375_s16, [#allocation17], %s5099_s2, %s5099_s2, %s4186_s30  }
  0xc2   : > { %s44_s21 = sadd.s32 1, %s4176_s17  ;;  %s51_s9 = sadd.s32 1, %s4168_s15 }
  0xc3   : > { %p46_p8 = scmp.ge.s32.totalorder %s44_s21, 2  ;;  %p58_p1 = scmp.ne.s32.totalorder %s4168_s15, %s4164_s14 }
  0xc4   : > { %p59_p3 = scmp.eq.s32.totalorder %s4180_s18, 0  ;;  %p64_p12 = scmp.ne.s32.totalorder %s4164_s14, %s4160_s13 }
  0xc5   : > { %s5131_s21 = smov (%p46_p8, %s44_s21), 0  ;;  %p284_p6 = scmp.eq.s32.totalorder %s4291_s19, 1 }
  0xc6   : > { %p4466_p11 = por %p59_p3, %p58_p1  ;;  %s48_s30 = ssub.s32 %s4176_s17, %s5131_s21 }
  0xc7   : > { %p49_p13 = scmp.eq.s32.totalorder %s48_s30, 0  ;;  %p5101_p0 = scmp.eq.s32.totalorder %s4291_s19, 0 }
  0xc8   : > { %p4481_p4 = por %p284_p6, %p58_p1  ;;  %p290_p7 = scmp.eq.s32.totalorder %s3247_s23, 1 }
  0xc9   : > { %p4477_p2 = por %p5101_p0, %p64_p12  ;;  %p3645_p5 = scmp.lt.s32.totalorder %s4180_s18, 2 }
  0xca   : > { %s5103_s24 = scalar_select %p4481_p4, 1, 0 }
  0xcb   : > { %s4486_s26 = scalar_select %p49_p13, %s4168_s15, %s51_s9  }
  0xcc   : > { %p4488_p9 = por %p290_p7, %p64_p12  ;;  %s394_s22 = sand.u32 1, %s4168_s15  }
  0xcd   : > { %s3374_s25 = sshll.u32 %s4176_s17, 8  ;;  %s4495_s11 = sshll.u32 %s394_s22, 4 }
  0xce   : > { %s5104_s28 = scalar_select %p4488_p9, 1, 0 }
  0xcf   : > { %s5105_s0 = sld [smem:[#allocation27_spill]]  ;;  %s398_s23 = scalar_lea.vmem [#allocation4], %s4495_s11 }
  0xd0   : > { %s405_s9 = sshll.u32 %s398_s23, 4  ;;  %p4505_p10 = pnand %p3645_p5, %p4466_p11  ;;  %s4509_s9 = int_to_ptr.vmem [resolvable:$true] %s405_s9 }
  0xd1   : > { %s4514_s29 = scalar_lea.hbm %s5059_s1, %s3374_s25  ;;  %s4516_s27 = scalar_lea.sflag [#allocation5], %s394_s22 }
  0xd2   : > { %p4020_p1 = pneg %p4505_p10 }
  0xd5   : > { %s4500_s8 = scalar_lea.hbm %s5105_s0, %s3374_s25  ;;  %s4023_s4 = scalar_lea.hbm %s5105_s0, 512 }
  0xd6   : > { %s4018_s3 = scalar_lea.hbm %s4500_s8, 256  ;;  %p4024_p12 = scmp.lt.u32.totalorder %s4500_s8, %s5105_s0 }
  0xd7   : > { %p4019_p8 = scmp.ne.s32.totalorder %s4500_s8, %s4018_s3  ;;  %p4025_p6 = scmp.lt.u32.totalorder %s4023_s4, %s4018_s3 }
  0xd8   : > { %p4027_p0 = scmp.lt.u32.totalorder %s4018_s3, %s4500_s8 }
  0xd9   : > { %p4021_p3 = pnand %p4020_p1, %p4019_p8  ;;  %p4026_p13 = por %p4025_p6, %p4024_p12 }
  0xdb   : > { %p4022_p11 = pneg %p4021_p3  ;;  %p4028_p7 = por %p4027_p0, %p4026_p13 }
  0xdd   : > { %p4029_p5 = pnand %p4028_p7, %p4022_p11 }
  0xdf   : > { %4032 = shalt.err (!%p4029_p5)
}
  0xe0   : > { %s4033_s10 = scalar_lea.vmem %s4509_s9, 256  ;;  %s4192_s22 = smov [#allocation4]  }
  0xe1   : > { %p4034_p8 = scmp.ne.s32.totalorder %s4509_s9, %s4033_s10  ;;  %s4038_s25 = sshll.u32 %s4192_s22, 4  ;;  %s4039_s25 = int_to_ptr.vmem [resolvable:$false] %s4038_s25 }
  0xe2   : > { %s4040_s5 = scalar_lea.vmem %s4039_s25, 512  ;;  %p4041_p4 = scmp.lt.s32.totalorder %s4509_s9, %s4039_s25 }
  0xe3   : > { %p4036_p3 = pnand %p4034_p8, %p4020_p1  ;;  %p4042_p12 = scmp.lt.s32.totalorder %s4040_s5, %s4033_s10 }
  0xe5   : > { %p4037_p9 = pneg %p4036_p3  ;;  %p4043_p6 = por %p4042_p12, %p4041_p4 }
  0xe7   : > { %p4044_p13 = pnand %p4043_p6, %p4037_p9 }
  0xe9   : > { %4047 = shalt.err (!%p4044_p13)
}
  0xea   : > { %s5107_s3 = smov 8   ;;  %s5108_s4 = smov 128  }
  0xeb   : > { %3631 = dma.hbm_to_vmem [thread:$0]  (!%p4505_p10), %s4500_s8, 256, %s4509_s9, %s4516_s27, %s5108_s4, %s5108_s4, %s5107_s3  }
  0xec   : > { %s419_s6 = scalar_lea.vmem [#allocation7], %s4495_s11  ;;  %s415_s12 = sand.u32 1, %s4180_s18  }
  0xed   : > { %s426_s2 = sshll.u32 %s419_s6, 4  ;;  %s4551_s23 = scalar_lea.sflag [#allocation8], %s415_s12  ;;  %s4549_s2 = int_to_ptr.vmem [resolvable:$true] %s426_s2 }
  0xee   : > { %s4048_s10 = scalar_lea.hbm %s4514_s29, 256  ;;  %s4053_s5 = scalar_lea.hbm %s5059_s1, 512 }
  0xef   : > { %p4049_p4 = scmp.ne.s32.totalorder %s4514_s29, %s4048_s10  ;;  %p4054_p0 = scmp.lt.u32.totalorder %s4514_s29, %s5059_s1 }
  0xf0   : > { %p4055_p7 = scmp.lt.u32.totalorder %s4053_s5, %s4048_s10  ;;  %p4057_p8 = scmp.lt.u32.totalorder %s4048_s10, %s4514_s29 }
  0xf1   : > { %p4051_p9 = pnand %p4049_p4, %p4020_p1 }
  0xf2   : > { %p4056_p5 = por %p4055_p7, %p4054_p0 }
  0xf3   : > { %p4052_p11 = pneg %p4051_p9 }
  0xf4   : > { %p4058_p3 = por %p4057_p8, %p4056_p5 }
  0xf6   : > { %p4059_p12 = pnand %p4058_p3, %p4052_p11 }
  0xf8   : > { %4062 = shalt.err (!%p4059_p12)
}
  0xf9   : > { %s4063_s27 = scalar_lea.vmem %s4549_s2, 256  ;;  %s4193_s11 = smov [#allocation7]  }
  0xfa   : > { %p4064_p6 = scmp.ne.s32.totalorder %s4549_s2, %s4063_s27  ;;  %s4068_s8 = sshll.u32 %s4193_s11, 4  ;;  %s4069_s8 = int_to_ptr.vmem [resolvable:$false] %s4068_s8 }
  0xfb   : > { %s4070_s0 = scalar_lea.vmem %s4069_s8, 512  ;;  %p4071_p9 = scmp.lt.s32.totalorder %s4549_s2, %s4069_s8 }
  0xfc   : > { %p4066_p13 = pnand %p4064_p6, %p4020_p1  ;;  %p4072_p0 = scmp.lt.s32.totalorder %s4070_s0, %s4063_s27 }
  0xfe   : > { %p4067_p4 = pneg %p4066_p13  ;;  %p4073_p7 = por %p4072_p0, %p4071_p9 }
 0x100   : > { %p4074_p5 = pnand %p4073_p7, %p4067_p4 }
 0x102   : > { %4077 = shalt.err (!%p4074_p5)
}
 0x103   : > { %3634 = dma.hbm_to_vmem [thread:$0]  (!%p4505_p10), %s4514_s29, 256, %s4549_s2, %s4551_s23, %s5108_s4, %s5108_s4, %s5107_s3  }
 0x104   : > { %p5109_p1 = scmp.ne.s32.totalorder %s5090_s20, 0 }
 0x105   : > { %s4583_s7 = sand.u32 (!%p5109_p1), 1, %s4164_s14  }
 0x106   : > { %438 = sbr.rel (%p5109_p1) target bundleno = 2927 (0xb6f), region = 60  ;;  %s4586_s9 = sshll.u32 (!%p5109_p1), %s4583_s7, 4 }
 0x107   : > { %s441_s30 = scalar_lea.sflag (!%p5109_p1), [#allocation5], %s4583_s7  ;;  %s4590_s6 = scalar_lea.vmem (!%p5109_p1), [#allocation4], %s4586_s9 }
 0x10d   : > { %4131 = dma.done.wait (%p4477_p2), %s441_s30, 256  }
 0x10e   : > { %4133 = vsyncadd (%p4477_p2), %s441_s30, 4294967040  ;;  %s449_s20 = sand.u32 1, %s4291_s19   ;;  %s453_s3 = scalar_lea.vmem [#allocation7], %s4586_s9 }
 0x10f   : > { %s450_s29 = scalar_lea.sflag [#allocation8], %s449_s20 }
 0x110   : > { %4135 = dma.done.wait (%p4477_p2), %s450_s29, 256  }
 0x111   : > { %4137 = vsyncadd (%p4477_p2), %s450_s29, 4294967040  ;;  %p5110_p10 = scmp.eq.s32.totalorder %s4291_s19, 0 }
 0x113   : > { %4139 = dma.done.wait (%p5110_p10), [#allocation8], 1024   ;;  %p5111_p11 = pmov %p5110_p10 }
 0x114   : > { %p5112_p8 = pmov %p5110_p10 }
 0x115   : > { %4141 = vsyncadd (%p5111_p11), [#allocation8], 4294966272 }
 0x116   : > { %4143 = dma.done.wait (%p5112_p8), [#allocation11], 2048   ;;  %p5113_p3 = pmov %p5112_p8 }
 0x118   : > { %4145 = vsyncadd (%p5113_p3), [#allocation11], 4294965248  ;;  %p5114_p12 = pmov %p5113_p3 }
 0x119   : > { %p5115_p6 = pmov %p5113_p3 }
 0x11a   : > { %4147 = dma.done.wait (%p5114_p12), [#allocation14], 3072  }
 0x11b   : > { %4149 = vsyncadd (%p5115_p6), [#allocation14], 4294964224  ;;  %p5116_p2 = pmov %p5113_p3 }
 0x11d   : > { %4151 = dma.done.wait (%p5116_p2), [#allocation17], 2048   ;;  %p5117_p13 = pmov %p5116_p2 }
 0x11e   : > { %v4194_v0 = vmov 0.0   ;;  %vm4195_vm0 = vmmov 0   ;;  %v3736_v1 = vld [vmem:[#allocation10] sm:$0xff]   ;;  %v3737_v2 = vld [vmem:[#allocation10 + $0x8] sm:$0xff]   ;;  %v3738_v3 = vld [vmem:[#allocation10 + $0x10] sm:$0xff]   ;;  %s5118_s4 = sld [smem:[#allocation35_spill]]  ;;  %v778_v49 = vlaneseq }
 0x11f   : > { %4153 = vsyncadd (%p5117_p13), [#allocation17], 4294965248  ;;  %3451 = vmatprep.subr.bf16.mxu0 %v4194_v0  ;;  %3467 = vmatprep.mubr.msk.bf16.mxu0 %vm4195_vm0, %v4194_v0  ;;  %v3739_v4 = vld [vmem:[#allocation10 + $0x18] sm:$0xff]   ;;  %v3740_v5 = vld [vmem:[#allocation10 + $0x20] sm:$0xff]   ;;  %s4196_s2 = smov 64   ;;  %s4197_s12 = smov 96  }
 0x120   : > { %3471 = vmatprep.subr.bf16.mxu1 %v4194_v0  ;;  %3487 = vmatprep.mubr.msk.bf16.mxu1 %vm4195_vm0, %v4194_v0  ;;  %v3741_v6 = vld [vmem:[#allocation10 + $0x28] sm:$0xff]   ;;  %v3742_v7 = vld [vmem:[#allocation10 + $0x30] sm:$0xff]   ;;  %v3743_v12 = vld [vmem:[#allocation10 + $0x38] sm:$0xff]   ;;  %s4198_s23 = smov 32   ;;  %v4199_v47 = vmov 1983009808  }
 0x121   : > { %3452 = vmatpush3.bf16.msra.mxu0 %v3736_v1  ;;  %v4630_v8 = vld [vmem:[%s4590_s6] sm:$0xff]  ;;  %v4633_v9 = vld [vmem:[%s4590_s6 + $0x8] sm:$0xff]  ;;  %v776_v48 = vunpack.c.l.s4 %v4199_v47  ;;  %v4200_v52 = vmov 1934713408   ;;  %v4701_v55 = vshrl.u32 %v778_v49, 7  ;;  %vm1049_vm1 = vcmask 261120  }
 0x122   : > { %3453 = vmatprep.subr.bf16.mxu0 %v4194_v0  ;;  %v527_v10 = vld [vmem:[%s453_s3] sm:$0xff]  ;;  %v528_v11 = vld [vmem:[%s453_s3 + $0x8] sm:$0xff]  ;;  %v642_v39 = vpack.c.bf16 %v4633_v9, %v4630_v8  ;;  %v808_v53 = vunpack.c.l.s4 %v4200_v52  ;;  %vm1963_vm2 = vcmask 130048   ;;  %vm2534_vm3 = vcmask 523264   ;;  %s5119_s3 = sld [smem:[#allocation34_spill]]  ;;  %s518_s5 = scalar_lea.vmem [#allocation18], %s4586_s9 }
 0x123   : > { %v529_v13 = vadd.f32 %v527_v10, %v4630_v8  ;;  %v530_v14 = vadd.f32 %v528_v11, %v4633_v9  ;;  %v3744_v15 = vld [vmem:[#allocation9] sm:$0xff]   ;;  %v3745_v17 = vld [vmem:[#allocation9 + $0x8] sm:$0xff]   ;;  %v3746_v18 = vld [vmem:[#allocation9 + $0x10] sm:$0xff]   ;;  %v777_v54 = vunpack.c.0.s8 %v776_v48  ;;  %vm2537_vm4 = vcmask 785408   ;;  %s3078_s27 = sshll.u32 %s518_s5, 4  ;;  %s5121_s0 = sld [smem:[#allocation36_spill]]  ;;  %s5009_s27 = int_to_ptr.vmem [resolvable:$true] %s3078_s27 }
 0x124   : > { %v3747_v19 = vld [vmem:[#allocation9 + $0x18] sm:$0xff]   ;;  %v3748_v20 = vld [vmem:[#allocation9 + $0x20] sm:$0xff]   ;;  %v3749_v21 = vld [vmem:[#allocation9 + $0x28] sm:$0xff]   ;;  %v809_v60 = vunpack.c.0.s8 %v808_v53  ;;  %s4078_s20 = scalar_lea.vmem %s5009_s27, 256  ;;  %p5122_p9 = scmp.ne.s32.totalorder %s5103_s24, 0 }
 0x125   : > { %3454 = vmatpush3.bf16.msra.mxu0 %v3737_v2  ;;  %v531_v16 = vpack.c.bf16 %v530_v14, %v529_v13  ;;  %v3750_v22 = vld [vmem:[#allocation9 + $0x30] sm:$0xff]   ;;  %v3751_v23 = vld [vmem:[#allocation9 + $0x38] sm:$0xff]   ;;  %v3752_v24 = vld [vmem:[#allocation12] sm:$0xff]   ;;  %v4704_v61 = vsub.s32 %v777_v54, %v4701_v55  ;;  %p4079_p4 = scmp.ne.s32.totalorder %s5009_s27, %s4078_s20  ;;  %s4202_s9 = smov [#allocation18]  }
 0x126   : > { %3455 = vmatprep.subr.bf16.mxu0 %v4194_v0  ;;  %3472 = vmatpush3.bf16.msra.mxu1 %v3752_v24  ;;  %v3753_v25 = vld [vmem:[#allocation12 + $0x8] sm:$0xff]   ;;  %v3754_v26 = vld [vmem:[#allocation12 + $0x10] sm:$0xff]   ;;  %v3272_v27 = vld [vmem:[%s5118_s4 + $0x1] ss:$0 sm:$0xff]  ;;  %v4711_v9 = vsub.s32 %v809_v60, %v4701_v55  ;;  %s4082_s29 = sshll.u32 %s4202_s9, 4  ;;  %s4083_s29 = int_to_ptr.vmem [resolvable:$false] %s4082_s29 }
 0x127   : > { %3473 = vmatprep.subr.bf16.mxu1 %v4194_v0  ;;  %v3755_v31 = vld [vmem:[#allocation12 + $0x18] sm:$0xff]   ;;  %v3756_v35 = vld [vmem:[#allocation12 + $0x20] sm:$0xff]   ;;  %v3757_v36 = vld [vmem:[#allocation12 + $0x28] sm:$0xff]   ;;  %p4080_p0 = pnand %p4079_p4, %p5122_p9  ;;  %p4085_p5 = scmp.lt.s32.totalorder %s5009_s27, %s4083_s29 }
 0x128   : > { %v3758_v37 = vld [vmem:[#allocation12 + $0x30] sm:$0xff]   ;;  %v3759_v38 = vld [vmem:[#allocation12 + $0x38] sm:$0xff]   ;;  %v3298_v40 = vld [vmem:[%s5118_s4] ss:$0 sm:$0xff] }
 0x129   : > { %3456 = vmatpush3.bf16.msra.mxu0 %v3738_v3  ;;  %p4081_p7 = pneg %p4080_p0 }
 0x12a   : > { %3457 = vmatprep.subr.bf16.mxu0 %v4194_v0  ;;  %3474 = vmatpush3.bf16.msra.mxu1 %v3753_v25 }
 0x12b   : > { %3475 = vmatprep.subr.bf16.mxu1 %v4194_v0 }
 0x12d   : > { %3458 = vmatpush3.bf16.msra.mxu0 %v3739_v4 }
 0x12e   : > { %3459 = vmatprep.subr.bf16.mxu0 %v4194_v0  ;;  %3476 = vmatpush3.bf16.msra.mxu1 %v3754_v26 }
 0x12f   : > { %3477 = vmatprep.subr.bf16.mxu1 %v4194_v0 }
 0x131   : > { %3460 = vmatpush3.bf16.msra.mxu0 %v3740_v5 }
 0x132   : > { %3461 = vmatprep.subr.bf16.mxu0 %v4194_v0  ;;  %3478 = vmatpush3.bf16.msra.mxu1 %v3755_v31 }
 0x133   : > { %3479 = vmatprep.subr.bf16.mxu1 %v4194_v0 }
 0x135   : > { %3462 = vmatpush3.bf16.msra.mxu0 %v3741_v6 }
 0x136   : > { %3463 = vmatprep.subr.bf16.mxu0 %v4194_v0  ;;  %3480 = vmatpush3.bf16.msra.mxu1 %v3756_v35 }
 0x137   : > { %3481 = vmatprep.subr.bf16.mxu1 %v4194_v0 }
 0x139   : > { %3464 = vmatpush3.bf16.msra.mxu0 %v3742_v7 }
 0x13a   : > { %3465 = vmatprep.subr.bf16.mxu0 %v4194_v0  ;;  %3482 = vmatpush3.bf16.msra.mxu1 %v3757_v36 }
 0x13b   : > { %3483 = vmatprep.subr.bf16.mxu1 %v4194_v0 }
 0x13d   : > { %3466 = vmatpush3.bf16.msra.mxu0 %v3743_v12 }
 0x13e   : > { %3491 = vmatprep.subr.bf16.mxu0 %v4194_v0  ;;  %3484 = vmatpush3.bf16.msra.mxu1 %v3758_v37 }
 0x13f   : > { %3485 = vmatprep.subr.bf16.mxu1 %v4194_v0 }
 0x140   : > { %3468 = vmatmul.mubr.bf16.vlgmr.msra.gmra.mrb[0].mxu0 %v531_v16 }
 0x141   : > { %3492 = vmatpush3.bf16.msra.mxu0 %v3744_v15  ;;  %3507 = vmatprep.mubr.msk.bf16.mxu0 %vm4195_vm0, %v4194_v0 }
 0x142   : > { %3493 = vmatprep.subr.bf16.mxu0 %v4194_v0  ;;  %3486 = vmatpush3.bf16.msra.mxu1 %v3759_v38 }
 0x143   : > { %3511 = vmatprep.subr.bf16.mxu1 %v4194_v0 }
 0x145   : > { %3494 = vmatpush3.bf16.msra.mxu0 %v3745_v17  ;;  %3488 = vmatmul.mubr.bf16.vlgmr.msra.gmra.mrb[0].mxu1 %v642_v39 }
 0x146   : > { %3495 = vmatprep.subr.bf16.mxu0 %v4194_v0  ;;  %3513 = vmatprep.mubr.msk.bf16.mxu1 %vm4195_vm0, %v4194_v0 }
 0x149   : > { %3496 = vmatpush3.bf16.msra.mxu0 %v3746_v18 }
 0x14a   : > { %3497 = vmatprep.subr.bf16.mxu0 %v4194_v0 }
 0x14d   : > { %3498 = vmatpush3.bf16.msra.mxu0 %v3747_v19 }
 0x14e   : > { %3499 = vmatprep.subr.bf16.mxu0 %v4194_v0 }
 0x151   : > { %3500 = vmatpush3.bf16.msra.mxu0 %v3748_v20 }
 0x152   : > { %3501 = vmatprep.subr.bf16.mxu0 %v4194_v0 }
 0x155   : > { %3502 = vmatpush3.bf16.msra.mxu0 %v3749_v21 }
 0x156   : > { %3503 = vmatprep.subr.bf16.mxu0 %v4194_v0 }
 0x159   : > { %3504 = vmatpush3.bf16.msra.mxu0 %v3750_v22 }
 0x15a   : > { %3505 = vmatprep.subr.bf16.mxu0 %v4194_v0 }
 0x15d   : > { %3506 = vmatpush3.bf16.msra.mxu0 %v3751_v23 }
 0x15e   : > { %3559 = vmatprep.subr.bf16.mxu0 %v4194_v0 }
 0x160   : > { %3508 = vmatmul.mubr.bf16.vlgmr.msra.gmra.mrb[4].mxu0 %v531_v16 }
 0x161   : > { %3575 = vmatprep.mubr.msk.bf16.mxu0 %vm4195_vm0, %v4194_v0 }
 0x213   : > { %v635_v28 = vpop.f32.mrb[0].mxu0 }
 0x214   : > { %v4662_v29 = vadd.f32 %v3272_v27, %v635_v28  ;;  %v3469_v30 = vpop.f32.mrb[1].mxu0 }
 0x215   : > { %v638_v32 = vpop.f32.mrb[2].mxu0 }
 0x216   : > { %761 = vrot.lane.b32.xlu1 %v4662_v29, %s4196_s2  ;;  %755 = vrot.lane.b32.xlu0 %v4662_v29, %s4197_s12  ;;  %v3470_v33 = vpop.f32.mrb[3].mxu0  ;;  %v639_v34 = vadd.f32 %v3272_v27, %v638_v32 }
 0x21a   : > { %763 = vrot.lane.b32.xlu1 %v639_v34, %s4196_s2  ;;  %757 = vrot.lane.b32.xlu0 %v639_v34, %s4197_s12 }
 0x21e   : > { %769 = vrot.lane.b32.xlu1 %v639_v34, %s4198_s23  ;;  %767 = vrot.lane.b32.xlu0 %v4662_v29, %s4198_s23 }
 0x233   : > { %v1467_v41 = vpop.f32.mrb[4].mxu0 }
 0x234   : > { %v4685_v42 = vadd.f32 %v3298_v40, %v1467_v41  ;;  %v3509_v43 = vpop.f32.mrb[5].mxu0 }
 0x235   : > { %v1470_v44 = vpop.f32.mrb[6].mxu0 }
 0x236   : > { %v4687_v45 = vadd.f32 %v3298_v40, %v1470_v44  ;;  %1476 = vrot.lane.b32.xlu0 %v4685_v42, %s4197_s12  ;;  %v3510_v46 = vpop.f32.mrb[7].mxu0 }
 0x238   : > { %1478 = vrot.lane.b32.xlu1 %v4687_v45, %s4197_s12 }
 0x23a   : > { %1482 = vrot.lane.b32.xlu0 %v4685_v42, %s4196_s2 }
 0x23c   : > { %1484 = vrot.lane.b32.xlu1 %v4687_v45, %s4196_s2 }
 0x23e   : > { %1488 = vrot.lane.b32.xlu0 %v4685_v42, %s4198_s23 }
 0x240   : > { %1490 = vrot.lane.b32.xlu1 %v4687_v45, %s4198_s23 }
 0x288   : > { %v762_v50 = vpop.permute.xlu1 %761  ;;  %v756_v51 = vpop.permute.xlu0 %755 }
 0x289   : > { %v773_v62 = vcombine.low %v4662_v29, %v762_v50  ;;  %v774_v63 = vcombine.high %v4662_v29, %v762_v50 }
 0x28b   : > { %v781_v14 = vrot.slane %v773_v62, %v4704_v61  ;;  %v788_v15 = vrot.slane %v774_v63, %v4704_v61 }
 0x28c   : > { %v764_v56 = vpop.permute.xlu1 %763  ;;  %v758_v57 = vpop.permute.xlu0 %757 }
 0x28d   : > { %v841_v58 = vcombine.low %v639_v34, %v764_v56  ;;  %v842_v59 = vcombine.high %v639_v34, %v764_v56 }
 0x28f   : > { %v849_v7 = vrot.slane %v841_v58, %v4704_v61  ;;  %v856_v8 = vrot.slane %v842_v59, %v4704_v61 }
 0x290   : > { %v770_v1 = vpop.permute.xlu1 %769  ;;  %v768_v2 = vpop.permute.xlu0 %767 }
 0x291   : > { %v857_v3 = vcombine.low %v758_v57, %v770_v1  ;;  %v858_v4 = vcombine.high %v758_v57, %v770_v1  ;;  %v789_v5 = vcombine.low %v756_v51, %v768_v2  ;;  %v790_v6 = vcombine.high %v756_v51, %v768_v2 }
 0x293   : > { %v865_v10 = vrot.slane %v857_v3, %v4704_v61  ;;  %v872_v11 = vrot.slane %v858_v4, %v4704_v61  ;;  %v797_v12 = vrot.slane %v789_v5, %v4704_v61  ;;  %v804_v13 = vrot.slane %v790_v6, %v4704_v61 }
 0x295   : > { %v873_v16 = vcombine.low %v849_v7, %v865_v10  ;;  %v874_v17 = vcombine.high %v849_v7, %v865_v10  ;;  %v889_v18 = vcombine.low %v856_v8, %v872_v11  ;;  %v890_v19 = vcombine.high %v856_v8, %v872_v11 }
 0x296   : > { %v805_v20 = vcombine.low %v781_v14, %v797_v12  ;;  %v806_v21 = vcombine.high %v781_v14, %v797_v12  ;;  %v821_v22 = vcombine.low %v788_v15, %v804_v13  ;;  %v822_v23 = vcombine.high %v788_v15, %v804_v13 }
 0x297   : > { %v881_v24 = vrot.slane %v873_v16, %v4711_v9  ;;  %v888_v25 = vrot.slane %v874_v17, %v4711_v9  ;;  %v897_v26 = vrot.slane %v889_v18, %v4711_v9  ;;  %v904_v27 = vrot.slane %v890_v19, %v4711_v9 }
 0x298   : > { %v813_v28 = vrot.slane %v805_v20, %v4711_v9  ;;  %v820_v29 = vrot.slane %v806_v21, %v4711_v9  ;;  %v829_v30 = vrot.slane %v821_v22, %v4711_v9  ;;  %v836_v31 = vrot.slane %v822_v23, %v4711_v9 }
 0x299   : > { %v977_v32 = vcombine.low %v881_v24, %v888_v25  ;;  %v3292_v33 = vcombine.high %v881_v24, %v888_v25  ;;  %v993_v34 = vcombine.low %v897_v26, %v904_v27  ;;  %v3293_v35 = vcombine.high %v897_v26, %v904_v27 }
 0x29a   : > { %v909_v36 = vcombine.low %v813_v28, %v820_v29  ;;  %v3290_v37 = vcombine.high %v813_v28, %v820_v29  ;;  %v925_v38 = vcombine.low %v829_v30, %v836_v31  ;;  %v3291_v39 = vcombine.high %v829_v30, %v836_v31 }
 0x29b   : > { %v984_v40 = vrot.slane %v977_v32, %v4704_v61  ;;  %v992_v41 = vrot.slane %v3292_v33, %v4704_v61  ;;  %v1000_v43 = vrot.slane %v993_v34, %v4704_v61  ;;  %v1008_v44 = vrot.slane %v3293_v35, %v4704_v61 }
 0x29c   : > { %v916_v46 = vrot.slane %v909_v36, %v4704_v61  ;;  %v924_v47 = vrot.slane %v3290_v37, %v4704_v61  ;;  %v932_v48 = vrot.slane %v925_v38, %v4704_v61  ;;  %v940_v49 = vrot.slane %v3291_v39, %v4704_v61 }
 0x29d   : > { %v1009_v50 = vcombine.low %v984_v40, %v992_v41  ;;  %v1010_v51 = vcombine.high %v984_v40, %v992_v41  ;;  %v1025_v52 = vcombine.low %v1000_v43, %v1008_v44  ;;  %v1026_v53 = vcombine.high %v1000_v43, %v1008_v44 }
 0x29e   : > { %v941_v54 = vcombine.low %v916_v46, %v924_v47  ;;  %v942_v56 = vcombine.high %v916_v46, %v924_v47  ;;  %v957_v57 = vcombine.low %v932_v48, %v940_v49  ;;  %v958_v58 = vcombine.high %v932_v48, %v940_v49 }
 0x29f   : > { %v1017_v59 = vrot.slane %v1009_v50, %v4711_v9  ;;  %v1024_v60 = vrot.slane %v1010_v51, %v4711_v9  ;;  %v1033_v62 = vrot.slane %v1025_v52, %v4711_v9  ;;  %v1040_v63 = vrot.slane %v1026_v53, %v4711_v9 }
 0x2a0   : > { %v949_v1 = vrot.slane %v941_v54, %v4711_v9  ;;  %v956_v2 = vrot.slane %v942_v56, %v4711_v9  ;;  %v965_v3 = vrot.slane %v957_v57, %v4711_v9  ;;  %v972_v4 = vrot.slane %v958_v58, %v4711_v9 }
 0x2a1   : > { %v1041_v5 = vcombine.low %v1017_v59, %v1033_v62  ;;  %v1042_v6 = vcombine.high %v1017_v59, %v1033_v62  ;;  %v1043_v7 = vcombine.low %v1024_v60, %v1040_v63  ;;  %v1044_v8 = vcombine.high %v1024_v60, %v1040_v63 }
 0x2a2   : > { %v973_v10 = vcombine.low %v949_v1, %v965_v3  ;;  %v974_v11 = vcombine.high %v949_v1, %v965_v3  ;;  %v975_v12 = vcombine.low %v956_v2, %v972_v4  ;;  %v976_v13 = vcombine.high %v956_v2, %v972_v4 }
 0x2a4   : > { %v1045_v14 = vpack.c.bf16 %v1041_v5, %v973_v10  ;;  %v1046_v15 = vpack.c.bf16 %v1042_v6, %v974_v11  ;;  %v1047_v16 = vpack.c.bf16 %v1043_v7, %v975_v12  ;;  %v1048_v17 = vpack.c.bf16 %v1044_v8, %v976_v13 }
 0x2a6   : > { %1050 = vst.msk [vmem:[#allocation2] sm:$0xff] %vm1049_vm1, %v1045_v14  ;;  %1051 = vst.msk [vmem:[#allocation2 + $0x8] sm:$0xff] %vm1049_vm1, %v1046_v15 }
 0x2a7   : > { %1052 = vst.msk [vmem:[#allocation2 + $0x10] sm:$0xff] %vm1049_vm1, %v1047_v16  ;;  %1053 = vst.msk [vmem:[#allocation2 + $0x18] sm:$0xff] %vm1049_vm1, %v1048_v17 }
 0x2a8   : > { %v1477_v18 = vpop.permute.xlu0 %1476 }
 0x2aa   : > { %v1479_v19 = vpop.permute.xlu1 %1478 }
 0x2ac   : > { %v1483_v20 = vpop.permute.xlu0 %1482 }
 0x2ad   : > { %v1770_v21 = vld [vmem:[#allocation2] sm:$0xff]  ;;  %v1494_v22 = vcombine.low %v4685_v42, %v1483_v20  ;;  %v1495_v23 = vcombine.high %v4685_v42, %v1483_v20 }
 0x2ae   : > { %v1779_v24 = vsel %vm1049_vm1, %v1770_v21, 0  ;;  %v1485_v25 = vpop.permute.xlu1 %1484 }
 0x2af   : > { %3512 = vmatpush3.bf16.xpose.msra.mxu1 %v1779_v24  ;;  %v1502_v29 = vrot.slane %v1494_v22, %v4704_v61  ;;  %v1509_v30 = vrot.slane %v1495_v23, %v4704_v61  ;;  %v1562_v31 = vcombine.low %v4687_v45, %v1485_v25  ;;  %v1563_v32 = vcombine.high %v4687_v45, %v1485_v25  ;;  %v1771_v24 = vld [vmem:[#allocation2 + $0x8] sm:$0xff] }
 0x2b0   : > { %v1489_v26 = vpop.permute.xlu0 %1488  ;;  %3517 = vmatprep.subr.bf16.mxu1 %v4194_v0 }
 0x2b1   : > { %v1510_v27 = vcombine.low %v1477_v18, %v1489_v26  ;;  %v1511_v28 = vcombine.high %v1477_v18, %v1489_v26  ;;  %v1570_v41 = vrot.slane %v1562_v31, %v4704_v61  ;;  %v1577_v43 = vrot.slane %v1563_v32, %v4704_v61 }
 0x2b2   : > { %v1491_v33 = vpop.permute.xlu1 %1490  ;;  %v1826_v26 = vsel %vm1049_vm1, %v1771_v24, 0 }
 0x2b3   : > { %v1518_v42 = vrot.slane %v1510_v27, %v4704_v61  ;;  %v1525_v34 = vrot.slane %v1511_v28, %v4704_v61  ;;  %v1578_v35 = vcombine.low %v1479_v19, %v1491_v33  ;;  %v1579_v36 = vcombine.high %v1479_v19, %v1491_v33  ;;  %v1772_v33 = vld [vmem:[#allocation2 + $0x10] sm:$0xff] }
 0x2b5   : > { %v1526_v37 = vcombine.low %v1502_v29, %v1518_v42  ;;  %v1527_v38 = vcombine.high %v1502_v29, %v1518_v42  ;;  %v1542_v39 = vcombine.low %v1509_v30, %v1525_v34  ;;  %v1543_v40 = vcombine.high %v1509_v30, %v1525_v34 }
 0x2b6   : > { %v1586_v44 = vrot.slane %v1578_v35, %v4704_v61  ;;  %v1593_v46 = vrot.slane %v1579_v36, %v4704_v61 }
 0x2b7   : > { %v1534_v45 = vrot.slane %v1526_v37, %v4711_v9  ;;  %v1541_v47 = vrot.slane %v1527_v38, %v4711_v9  ;;  %v1550_v48 = vrot.slane %v1542_v39, %v4711_v9  ;;  %v1557_v49 = vrot.slane %v1543_v40, %v4711_v9 }
 0x2b8   : > { %v1594_v50 = vcombine.low %v1570_v41, %v1586_v44  ;;  %v1595_v51 = vcombine.high %v1570_v41, %v1586_v44  ;;  %v1610_v52 = vcombine.low %v1577_v43, %v1593_v46  ;;  %v1611_v53 = vcombine.high %v1577_v43, %v1593_v46  ;;  %v1773_v41 = vld [vmem:[#allocation2 + $0x18] sm:$0xff] }
 0x2b9   : > { %v1630_v54 = vcombine.low %v1534_v45, %v1541_v47  ;;  %v3307_v56 = vcombine.high %v1534_v45, %v1541_v47  ;;  %v1646_v57 = vcombine.low %v1550_v48, %v1557_v49  ;;  %v3308_v58 = vcombine.high %v1550_v48, %v1557_v49  ;;  %v746_v48 = vpop.f32.mrb[0].mxu1 }
 0x2ba   : > { %v1602_v59 = vrot.slane %v1594_v50, %v4711_v9  ;;  %v1609_v60 = vrot.slane %v1595_v51, %v4711_v9  ;;  %v1618_v62 = vrot.slane %v1610_v52, %v4711_v9  ;;  %v1625_v63 = vrot.slane %v1611_v53, %v4711_v9  ;;  %v3489_v49 = vpop.f32.mrb[1].mxu1 }
 0x2bb   : > { %v1637_v1 = vrot.slane %v1630_v54, %v4704_v61  ;;  %v1645_v2 = vrot.slane %v3307_v56, %v4704_v61  ;;  %v1653_v3 = vrot.slane %v1646_v57, %v4704_v61  ;;  %v1661_v4 = vrot.slane %v3308_v58, %v4704_v61  ;;  %v749_v50 = vpop.f32.mrb[2].mxu1 }
 0x2bc   : > { %v1698_v5 = vcombine.low %v1602_v59, %v1609_v60  ;;  %v3309_v6 = vcombine.high %v1602_v59, %v1609_v60  ;;  %v1714_v7 = vcombine.low %v1618_v62, %v1625_v63  ;;  %v3310_v8 = vcombine.high %v1618_v62, %v1625_v63  ;;  %v3490_v51 = vpop.f32.mrb[3].mxu1 }
 0x2bd   : > { %v1662_v10 = vcombine.low %v1637_v1, %v1645_v2  ;;  %v1678_v11 = vcombine.low %v1653_v3, %v1661_v4  ;;  %v1663_v30 = vcombine.high %v1637_v1, %v1645_v2  ;;  %v1679_v31 = vcombine.high %v1653_v3, %v1661_v4 }
 0x2be   : > { %v1705_v12 = vrot.slane %v1698_v5, %v4704_v61  ;;  %v1713_v13 = vrot.slane %v3309_v6, %v4704_v61  ;;  %v1721_v14 = vrot.slane %v1714_v7, %v4704_v61  ;;  %v1729_v15 = vrot.slane %v3310_v8, %v4704_v61 }
 0x2bf   : > { %v1670_v16 = vrot.slane %v1662_v10, %v4711_v9  ;;  %v1686_v17 = vrot.slane %v1678_v11, %v4711_v9  ;;  %v1677_v36 = vrot.slane %v1663_v30, %v4711_v9  ;;  %v1693_v37 = vrot.slane %v1679_v31, %v4711_v9 }
 0x2c0   : > { %v1730_v18 = vcombine.low %v1705_v12, %v1713_v13  ;;  %v1746_v19 = vcombine.low %v1721_v14, %v1729_v15  ;;  %v1731_v27 = vcombine.high %v1705_v12, %v1713_v13  ;;  %v1747_v28 = vcombine.high %v1721_v14, %v1729_v15 }
 0x2c1   : > { %v1694_v22 = vcombine.low %v1670_v16, %v1686_v17  ;;  %v1695_v32 = vcombine.high %v1670_v16, %v1686_v17  ;;  %v1873_v38 = vsel %vm1049_vm1, %v1772_v33, 0  ;;  %v1696_v40 = vcombine.low %v1677_v36, %v1693_v37  ;;  %v3281_v16 = vld [vmem:[%s5118_s4 + $0x2] ss:$0 sm:$0xff] }
 0x2c2   : > { %v1738_v20 = vrot.slane %v1730_v18, %v4711_v9  ;;  %v1754_v21 = vrot.slane %v1746_v19, %v4711_v9  ;;  %v1745_v42 = vrot.slane %v1731_v27, %v4711_v9  ;;  %v1761_v34 = vrot.slane %v1747_v28, %v4711_v9 }
 0x2c3   : > { %v1920_v44 = vsel %vm1049_vm1, %v1773_v41, 0  ;;  %v1697_v45 = vcombine.high %v1677_v36, %v1693_v37  ;;  %v4814_v17 = vadd.f32 %v3281_v16, %v746_v48  ;;  %v4820_v18 = vadd.f32 %v3281_v16, %v749_v50 }
 0x2c4   : > { %v1762_v23 = vcombine.low %v1738_v20, %v1754_v21  ;;  %v1763_v29 = vcombine.high %v1738_v20, %v1754_v21  ;;  %v1764_v39 = vcombine.low %v1745_v42, %v1761_v34  ;;  %v1765_v46 = vcombine.high %v1745_v42, %v1761_v34 }
 0x2c6   : > { %v1766_v25 = vpack.c.bf16 %v1762_v23, %v1694_v22  ;;  %v1767_v35 = vpack.c.bf16 %v1763_v29, %v1695_v32  ;;  %v1768_v43 = vpack.c.bf16 %v1764_v39, %v1696_v40  ;;  %v1769_v47 = vpack.c.bf16 %v1765_v46, %v1697_v45 }
 0x2c8   : > { %3514 = vmatmul.mubr.msk.bf16.vlgmr.msra.gmra.mrb[4].mxu1 %vm1049_vm1, %v1766_v25 }
 0x2c9   : > { %3518 = vmatpush3.bf16.xpose.msra.mxu1 %v1826_v26  ;;  %3519 = vmatprep.mubr.msk.bf16.mxu1 %vm4195_vm0, %v4194_v0 }
 0x2ca   : > { %3523 = vmatprep.subr.bf16.mxu1 %v4194_v0 }
 0x2d0   : > { %3520 = vmatmul.mubr.msk.bf16.vlgmr.msra.gmra.mrb[8].mxu1 %vm1049_vm1, %v1767_v35 }
 0x2d1   : > { %3524 = vmatpush3.bf16.xpose.msra.mxu1 %v1873_v38  ;;  %3525 = vmatprep.mubr.msk.bf16.mxu1 %vm4195_vm0, %v4194_v0 }
 0x2d2   : > { %3529 = vmatprep.subr.bf16.mxu1 %v4194_v0 }
 0x2d8   : > { %3526 = vmatmul.mubr.msk.bf16.vlgmr.msra.gmra.mrb[12].mxu1 %vm1049_vm1, %v1768_v43 }
 0x2d9   : > { %3530 = vmatpush3.bf16.xpose.msra.mxu1 %v1920_v44  ;;  %3531 = vmatprep.mubr.msk.bf16.mxu1 %vm4195_vm0, %v4194_v0 }
 0x2da   : > { %3535 = vmatprep.subr.bf16.mxu1 %v4194_v0 }
 0x2e0   : > { %3532 = vmatmul.mubr.msk.bf16.vlgmr.msra.gmra.mrb[16].mxu1 %vm1049_vm1, %v1769_v47 }
 0x2e1   : > { %3537 = vmatprep.mubr.msk.bf16.mxu1 %vm4195_vm0, %v4194_v0 }
 0x39b   : > { %v1815_v52 = vpop.f32.mrb[4].mxu1 }
 0x39c   : > { %v3515_v53 = vpop.f32.mrb[5].mxu1  ;;  %v1964_v54 = vsel %vm1963_vm2, %v1815_v52, -inf }
 0x39d   : > { %1965 = vmax.xlane.f32.xlu0 %v1964_v54  ;;  %v1818_v56 = vpop.f32.mrb[6].mxu1 }
 0x39e   : > { %v3516_v57 = vpop.f32.mrb[7].mxu1  ;;  %v1967_v58 = vsel %vm1963_vm2, %v1818_v56, -inf }
 0x39f   : > { %1968 = vmax.xlane.f32.xlu1 %v1967_v58 }
 0x3a3   : > { %v1862_v59 = vpop.f32.mrb[8].mxu1 }
 0x3a4   : > { %v3521_v60 = vpop.f32.mrb[9].mxu1  ;;  %v1970_v62 = vsel %vm1963_vm2, %v1862_v59, -inf }
 0x3a5   : > { %1971 = vmax.xlane.f32.xlu0 %v1970_v62  ;;  %v1865_v63 = vpop.f32.mrb[10].mxu1 }
 0x3a6   : > { %v3522_v1 = vpop.f32.mrb[11].mxu1  ;;  %v1973_v2 = vsel %vm1963_vm2, %v1865_v63, -inf }
 0x3a9   : > { %1974 = vmax.xlane.f32.xlu0 %v1973_v2 }
 0x3ab   : > { %v1909_v3 = vpop.f32.mrb[12].mxu1 }
 0x3ac   : > { %v3527_v4 = vpop.f32.mrb[13].mxu1  ;;  %v1976_v5 = vsel %vm1963_vm2, %v1909_v3, -inf }
 0x3ad   : > { %1977 = vmax.xlane.f32.xlu1 %v1976_v5  ;;  %v1912_v6 = vpop.f32.mrb[14].mxu1 }
 0x3ae   : > { %v3528_v7 = vpop.f32.mrb[15].mxu1  ;;  %v1979_v8 = vsel %vm1963_vm2, %v1912_v6, -inf }
 0x3af   : > { %1980 = vmax.xlane.f32.xlu0 %v1979_v8 }
 0x3b3   : > { %v1956_v10 = vpop.f32.mrb[16].mxu1 }
 0x3b4   : > { %v3533_v11 = vpop.f32.mrb[17].mxu1  ;;  %v1982_v12 = vsel %vm1963_vm2, %v1956_v10, -inf }
 0x3b5   : > { %1983 = vmax.xlane.f32.xlu1 %v1982_v12  ;;  %v1959_v13 = vpop.f32.mrb[18].mxu1 }
 0x3b6   : > { %v3534_v14 = vpop.f32.mrb[19].mxu1  ;;  %v1985_v15 = vsel %vm1963_vm2, %v1959_v13, -inf }
 0x3b7   : > { %1986 = vmax.xlane.f32.xlu0 %v1985_v15 }
 0x3c6   : > { %1056 = vrot.lane.b32.xlu1 %v4814_v17, %s4197_s12 }
 0x3ca   : > { %1062 = vrot.lane.b32.xlu1 %v4814_v17, %s4196_s2 }
 0x3cd   : > { %1058 = vrot.lane.b32.xlu0 %v4820_v18, %s4197_s12 }
 0x3ce   : > { %1064 = vrot.lane.b32.xlu1 %v4820_v18, %s4196_s2 }
 0x3d1   : > { %1068 = vrot.lane.b32.xlu0 %v4814_v17, %s4198_s23 }
 0x3d2   : > { %1070 = vrot.lane.b32.xlu1 %v4820_v18, %s4198_s23 }
 0x42a   : > { %v1966_v19 = vpop.xlane.xlu0 %1965 }
 0x42b   : > { %v1988_v20 = vsub.f32 %v1815_v52, %v1966_v19 }
 0x42c   : > { %v1969_v21 = vpop.xlane.xlu1 %1968 }
 0x42d   : > { %v1996_v22 = vmul.f32 1.442695, %v1988_v20  ;;  %v1989_v23 = vsub.f32 %v1818_v56, %v1969_v21 }
 0x42f   : > { %3808 = vpow2.f32 %v1996_v22  ;;  %v1998_v24 = vmul.f32 1.442695, %v1989_v23 }
 0x431   : > { %3810 = vpow2.f32 %v1998_v24 }
 0x432   : > { %v1972_v25 = vpop.xlane.xlu0 %1971 }
 0x433   : > { %v1990_v26 = vsub.f32 %v1862_v59, %v1972_v25 }
 0x435   : > { %v2000_v27 = vmul.f32 1.442695, %v1990_v26 }
 0x436   : > { %v1975_v28 = vpop.xlane.xlu0 %1974 }
 0x437   : > { %3812 = vpow2.f32 %v2000_v27  ;;  %v1991_v29 = vsub.f32 %v1865_v63, %v1975_v28 }
 0x439   : > { %v4830_v30 = vpop.eup %3808  ;;  %v2002_v31 = vmul.f32 1.442695, %v1991_v29 }
 0x43a   : > { %v1978_v32 = vpop.xlane.xlu1 %1977  ;;  %v2012_v33 = vsel %vm1963_vm2, %v4830_v30, 0.0 }
 0x43b   : > { %v4834_v42 = vpop.eup %3810  ;;  %3814 = vpow2.f32 %v2002_v31  ;;  %v1992_v34 = vsub.f32 %v1909_v3, %v1978_v32  ;;  %2013 = vadd.xlane.f32.xlu0 %v2012_v33 }
 0x43c   : > { %v1981_v35 = vpop.xlane.xlu0 %1980  ;;  %v2015_v36 = vsel %vm1963_vm2, %v4834_v42, 0.0 }
 0x43d   : > { %v2004_v37 = vmul.f32 1.442695, %v1992_v34  ;;  %v1993_v38 = vsub.f32 %v1912_v6, %v1981_v35  ;;  %2016 = vadd.xlane.f32.xlu1 %v2015_v36 }
 0x43f   : > { %3816 = vpow2.f32 %v2004_v37  ;;  %v2006_v39 = vmul.f32 1.442695, %v1993_v38 }
 0x441   : > { %v4838_v40 = vpop.eup %3812  ;;  %3818 = vpow2.f32 %v2006_v39 }
 0x442   : > { %v1984_v41 = vpop.xlane.xlu1 %1983  ;;  %v2018_v43 = vsel %vm1963_vm2, %v4838_v40, 0.0 }
 0x443   : > { %v1994_v44 = vsub.f32 %v1956_v10, %v1984_v41  ;;  %2019 = vadd.xlane.f32.xlu0 %v2018_v43 }
 0x444   : > { %v1987_v46 = vpop.xlane.xlu0 %1986 }
 0x445   : > { %v4842_v45 = vpop.eup %3814  ;;  %v2008_v47 = vmul.f32 1.442695, %v1994_v44  ;;  %v1995_v48 = vsub.f32 %v1959_v13, %v1987_v46 }
 0x446   : > { %v1057_v49 = vpop.permute.xlu1 %1056  ;;  %v2021_v50 = vsel %vm1963_vm2, %v4842_v45, 0.0 }
 0x447   : > { %3820 = vpow2.f32 %v2008_v47  ;;  %v2010_v51 = vmul.f32 1.442695, %v1995_v48  ;;  %2022 = vadd.xlane.f32.xlu0 %v2021_v50 }
 0x448   : > { %v1059_v52 = vpop.permute.xlu0 %1058 }
 0x449   : > { %v4846_v53 = vpop.eup %3816  ;;  %3822 = vpow2.f32 %v2010_v51 }
 0x44a   : > { %v1063_v54 = vpop.permute.xlu1 %1062  ;;  %v2024_v56 = vsel %vm1963_vm2, %v4846_v53, 0.0 }
 0x44b   : > { %v4850_v57 = vpop.eup %3818  ;;  %v1074_v58 = vcombine.low %v4814_v17, %v1063_v54  ;;  %v1075_v59 = vcombine.high %v4814_v17, %v1063_v54  ;;  %2025 = vadd.xlane.f32.xlu1 %v2024_v56 }
 0x44c   : > { %v1069_v60 = vpop.permute.xlu0 %1068  ;;  %v2027_v62 = vsel %vm1963_vm2, %v4850_v57, 0.0 }
 0x44d   : > { %v1090_v63 = vcombine.low %v1057_v49, %v1069_v60  ;;  %v1091_v1 = vcombine.high %v1057_v49, %v1069_v60  ;;  %2028 = vadd.xlane.f32.xlu0 %v2027_v62  ;;  %v1082_v3 = vrot.slane %v1074_v58, %v4704_v61  ;;  %v1089_v4 = vrot.slane %v1075_v59, %v4704_v61 }
 0x44e   : > { %v1065_v2 = vpop.permute.xlu1 %1064 }
 0x44f   : > { %v1098_v5 = vrot.slane %v1090_v63, %v4704_v61  ;;  %v1105_v6 = vrot.slane %v1091_v1, %v4704_v61  ;;  %v1142_v13 = vcombine.low %v4820_v18, %v1065_v2  ;;  %v1143_v14 = vcombine.high %v4820_v18, %v1065_v2 }
 0x451   : > { %v4860_v7 = vpop.eup %3820  ;;  %v1106_v8 = vcombine.low %v1082_v3, %v1098_v5  ;;  %v1107_v10 = vcombine.high %v1082_v3, %v1098_v5  ;;  %v1122_v11 = vcombine.low %v1089_v4, %v1105_v6  ;;  %v1123_v12 = vcombine.high %v1089_v4, %v1105_v6 }
 0x452   : > { %v1071_v15 = vpop.permute.xlu1 %1070  ;;  %v2030_v16 = vsel %vm1963_vm2, %v4860_v7, 0.0  ;;  %v1150_v29 = vrot.slane %v1142_v13, %v4704_v61  ;;  %v1157_v31 = vrot.slane %v1143_v14, %v4704_v61 }
 0x453   : > { %v4866_v17 = vpop.eup %3822  ;;  %v1114_v19 = vrot.slane %v1106_v8, %v4711_v9  ;;  %v1121_v20 = vrot.slane %v1107_v10, %v4711_v9  ;;  %v1130_v21 = vrot.slane %v1122_v11, %v4711_v9  ;;  %v1137_v22 = vrot.slane %v1123_v12, %v4711_v9  ;;  %2031 = vadd.xlane.f32.xlu1 %v2030_v16 }
 0x454   : > { %v1158_v23 = vcombine.low %v1059_v52, %v1071_v15  ;;  %v1159_v24 = vcombine.high %v1059_v52, %v1071_v15  ;;  %v2033_v18 = vsel %vm1963_vm2, %v4866_v17, 0.0 }
 0x455   : > { %v1210_v25 = vcombine.low %v1114_v19, %v1121_v20  ;;  %v3294_v26 = vcombine.high %v1114_v19, %v1121_v20  ;;  %v1226_v27 = vcombine.low %v1130_v21, %v1137_v22  ;;  %v3295_v28 = vcombine.high %v1130_v21, %v1137_v22  ;;  %2034 = vadd.xlane.f32.xlu0 %v2033_v18 }
 0x456   : > { %v1166_v32 = vrot.slane %v1158_v23, %v4704_v61  ;;  %v1173_v33 = vrot.slane %v1159_v24, %v4704_v61 }
 0x457   : > { %v1217_v34 = vrot.slane %v1210_v25, %v4704_v61  ;;  %v1225_v35 = vrot.slane %v3294_v26, %v4704_v61  ;;  %v1233_v36 = vrot.slane %v1226_v27, %v4704_v61  ;;  %v1241_v37 = vrot.slane %v3295_v28, %v4704_v61 }
 0x458   : > { %v1174_v38 = vcombine.low %v1150_v29, %v1166_v32  ;;  %v1175_v39 = vcombine.high %v1150_v29, %v1166_v32  ;;  %v1190_v41 = vcombine.low %v1157_v31, %v1173_v33  ;;  %v1191_v43 = vcombine.high %v1157_v31, %v1173_v33 }
 0x459   : > { %v1242_v49 = vcombine.low %v1217_v34, %v1225_v35  ;;  %v1243_v50 = vcombine.high %v1217_v34, %v1225_v35  ;;  %v1258_v51 = vcombine.low %v1233_v36, %v1241_v37  ;;  %v1259_v52 = vcombine.high %v1233_v36, %v1241_v37 }
 0x45a   : > { %v1182_v44 = vrot.slane %v1174_v38, %v4711_v9  ;;  %v1189_v46 = vrot.slane %v1175_v39, %v4711_v9  ;;  %v1198_v47 = vrot.slane %v1190_v41, %v4711_v9  ;;  %v1205_v48 = vrot.slane %v1191_v43, %v4711_v9 }
 0x45b   : > { %v1250_v2 = vrot.slane %v1242_v49, %v4711_v9  ;;  %v1257_v3 = vrot.slane %v1243_v50, %v4711_v9  ;;  %v1266_v4 = vrot.slane %v1258_v51, %v4711_v9  ;;  %v1273_v5 = vrot.slane %v1259_v52, %v4711_v9 }
 0x45c   : > { %v1278_v54 = vcombine.low %v1182_v44, %v1189_v46  ;;  %v3296_v56 = vcombine.high %v1182_v44, %v1189_v46  ;;  %v1294_v58 = vcombine.low %v1198_v47, %v1205_v48  ;;  %v3297_v59 = vcombine.high %v1198_v47, %v1205_v48 }
 0x45d   : > { %v1274_v16 = vcombine.low %v1250_v2, %v1266_v4  ;;  %v1275_v19 = vcombine.high %v1250_v2, %v1266_v4  ;;  %v1276_v20 = vcombine.low %v1257_v3, %v1273_v5  ;;  %v1277_v21 = vcombine.high %v1257_v3, %v1273_v5  ;;  %v3762_v2 = vld [vmem:[#allocation13 + $0x10] sm:$0xff]   ;;  %v3763_v3 = vld [vmem:[#allocation13 + $0x18] sm:$0xff]  }
 0x45e   : > { %v1285_v60 = vrot.slane %v1278_v54, %v4704_v61  ;;  %v1293_v62 = vrot.slane %v3296_v56, %v4704_v61  ;;  %v1301_v63 = vrot.slane %v1294_v58, %v4704_v61  ;;  %v1309_v1 = vrot.slane %v3297_v59, %v4704_v61 }
 0x460   : > { %v1310_v6 = vcombine.low %v1285_v60, %v1293_v62  ;;  %v1311_v8 = vcombine.high %v1285_v60, %v1293_v62  ;;  %v1326_v10 = vcombine.low %v1301_v63, %v1309_v1  ;;  %v1327_v11 = vcombine.high %v1301_v63, %v1309_v1 }
 0x462   : > { %v1318_v12 = vrot.slane %v1310_v6, %v4711_v9  ;;  %v1325_v13 = vrot.slane %v1311_v8, %v4711_v9  ;;  %v1334_v14 = vrot.slane %v1326_v10, %v4711_v9  ;;  %v1341_v15 = vrot.slane %v1327_v11, %v4711_v9 }
 0x464   : > { %v1342_v22 = vcombine.low %v1318_v12, %v1334_v14  ;;  %v1343_v23 = vcombine.high %v1318_v12, %v1334_v14  ;;  %v1344_v24 = vcombine.low %v1325_v13, %v1341_v15  ;;  %v1345_v18 = vcombine.high %v1325_v13, %v1341_v15 }
 0x466   : > { %v1346_v25 = vpack.c.bf16 %v1342_v22, %v1274_v16  ;;  %v1347_v26 = vpack.c.bf16 %v1343_v23, %v1275_v19  ;;  %v1348_v27 = vpack.c.bf16 %v1344_v24, %v1276_v20  ;;  %v1349_v28 = vpack.c.bf16 %v1345_v18, %v1277_v21 }
 0x468   : > { %1350 = vst.msk [vmem:[#allocation3] sm:$0xff] %vm1049_vm1, %v1346_v25  ;;  %1351 = vst.msk [vmem:[#allocation3 + $0x8] sm:$0xff] %vm1049_vm1, %v1347_v26 }
 0x469   : > { %1352 = vst.msk [vmem:[#allocation3 + $0x10] sm:$0xff] %vm1049_vm1, %v1348_v27  ;;  %1353 = vst.msk [vmem:[#allocation3 + $0x18] sm:$0xff] %vm1049_vm1, %v1349_v28 }
 0x46f   : > { %v2056_v29 = vld [vmem:[#allocation3] sm:$0xff]  ;;  %v2057_v43 = vld [vmem:[#allocation3 + $0x8] sm:$0xff] }
 0x470   : > { %3536 = vmatpush3.bf16.msra.mxu1 %v2056_v29  ;;  %v2058_v52 = vld [vmem:[#allocation3 + $0x10] sm:$0xff]  ;;  %v2059_v59 = vld [vmem:[#allocation3 + $0x18] sm:$0xff] }
 0x471   : > { %3541 = vmatprep.subr.bf16.mxu1 %v4194_v0 }
 0x4c8   : > { %v2014_v31 = vpop.xlane.xlu0 %2013 }
 0x4c9   : > { %3824 = vrcp.f32 %v2014_v31 }
 0x4ca   : > { %v2017_v32 = vpop.xlane.xlu1 %2016 }
 0x4cb   : > { %3826 = vrcp.f32 %v2017_v32 }
 0x4d0   : > { %v2020_v33 = vpop.xlane.xlu0 %2019 }
 0x4d1   : > { %3828 = vrcp.f32 %v2020_v33 }
 0x4d3   : > { %v3825_v34 = vpop.eup %3824 }
 0x4d4   : > { %v2023_v35 = vpop.xlane.xlu0 %2022  ;;  %v2044_v37 = vmul.f32 %v3825_v34, %v4830_v30 }
 0x4d5   : > { %v3827_v36 = vpop.eup %3826  ;;  %3830 = vrcp.f32 %v2023_v35 }
 0x4d6   : > { %v2045_v38 = vmul.f32 %v3827_v36, %v4834_v42 }
 0x4d8   : > { %v2026_v39 = vpop.xlane.xlu1 %2025  ;;  %v2052_v41 = vpack.c.bf16 %v2045_v38, %v2044_v37 }
 0x4d9   : > { %3832 = vrcp.f32 %v2026_v39 }
 0x4da   : > { %3538 = vmatmul.mubr.msk.bf16.vlgmr.msra.gmra.mrb[20].mxu1 %vm1963_vm2, %v2052_v41  ;;  %v2029_v44 = vpop.xlane.xlu0 %2028 }
 0x4db   : > { %3542 = vmatpush3.bf16.msra.mxu1 %v2057_v43  ;;  %3834 = vrcp.f32 %v2029_v44  ;;  %3543 = vmatprep.mubr.msk.bf16.mxu1 %vm4195_vm0, %v4194_v0  ;;  %v3829_v46 = vpop.eup %3828 }
 0x4dc   : > { %3547 = vmatprep.subr.bf16.mxu1 %v4194_v0  ;;  %v2046_v30 = vmul.f32 %v3829_v46, %v4838_v40 }
 0x4df   : > { %v3831_v47 = vpop.eup %3830 }
 0x4e0   : > { %v2047_v42 = vmul.f32 %v3831_v47, %v4842_v45  ;;  %v2032_v48 = vpop.xlane.xlu1 %2031 }
 0x4e1   : > { %3836 = vrcp.f32 %v2032_v48 }
 0x4e2   : > { %v2035_v49 = vpop.xlane.xlu0 %2034  ;;  %v2053_v50 = vpack.c.bf16 %v2047_v42, %v2046_v30 }
 0x4e3   : > { %3838 = vrcp.f32 %v2035_v49  ;;  %v3833_v51 = vpop.eup %3832 }
 0x4e4   : > { %3544 = vmatmul.mubr.msk.bf16.vlgmr.msra.gmra.mrb[24].mxu1 %vm1963_vm2, %v2053_v50  ;;  %v2048_v40 = vmul.f32 %v3833_v51, %v4846_v53  ;;  %v3761_v53 = vld [vmem:[#allocation13 + $0x8] sm:$0xff]  }
 0x4e5   : > { %v3835_v54 = vpop.eup %3834  ;;  %3548 = vmatpush3.bf16.msra.mxu1 %v2058_v52  ;;  %3549 = vmatprep.mubr.msk.bf16.mxu1 %vm4195_vm0, %v4194_v0 }
 0x4e6   : > { %v2049_v56 = vmul.f32 %v3835_v54, %v4850_v57  ;;  %3553 = vmatprep.subr.bf16.mxu1 %v4194_v0  ;;  %v3760_v57 = vld [vmem:[#allocation13] sm:$0xff]  }
 0x4e7   : > { %3560 = vmatpush3.bf16.msra.mxu0 %v3760_v57 }
 0x4e8   : > { %v2054_v45 = vpack.c.bf16 %v2049_v56, %v2048_v40  ;;  %3561 = vmatprep.subr.bf16.mxu0 %v4194_v0 }
 0x4eb   : > { %v3837_v58 = vpop.eup %3836  ;;  %3562 = vmatpush3.bf16.msra.mxu0 %v3761_v53 }
 0x4ec   : > { %3550 = vmatmul.mubr.msk.bf16.vlgmr.msra.gmra.mrb[28].mxu1 %vm1963_vm2, %v2054_v45  ;;  %v2050_v63 = vmul.f32 %v3837_v58, %v4860_v7  ;;  %3563 = vmatprep.subr.bf16.mxu0 %v4194_v0  ;;  %v3765_v7 = vld [vmem:[#allocation13 + $0x28] sm:$0xff]  }
 0x4ed   : > { %v3839_v60 = vpop.eup %3838  ;;  %3554 = vmatpush3.bf16.msra.mxu1 %v2059_v59  ;;  %3555 = vmatprep.mubr.msk.bf16.mxu1 %vm4195_vm0, %v4194_v0 }
 0x4ee   : > { %v2051_v62 = vmul.f32 %v3839_v60, %v4866_v17  ;;  %v3764_v17 = vld [vmem:[#allocation13 + $0x20] sm:$0xff]  }
 0x4ef   : > { %3564 = vmatpush3.bf16.msra.mxu0 %v3762_v2 }
 0x4f0   : > { %v2055_v1 = vpack.c.bf16 %v2051_v62, %v2050_v63  ;;  %3565 = vmatprep.subr.bf16.mxu0 %v4194_v0 }
 0x4f3   : > { %3566 = vmatpush3.bf16.msra.mxu0 %v3763_v3 }
 0x4f4   : > { %3556 = vmatmul.mubr.msk.bf16.vlgmr.msra.gmra.mrb[32].mxu1 %vm1963_vm2, %v2055_v1  ;;  %3567 = vmatprep.subr.bf16.mxu0 %v4194_v0 }
 0x4f7   : > { %3568 = vmatpush3.bf16.msra.mxu0 %v3764_v17 }
 0x4f8   : > { %3569 = vmatprep.subr.bf16.mxu0 %v4194_v0 }
 0x4fb   : > { %3570 = vmatpush3.bf16.msra.mxu0 %v3765_v7 }
 0x4fc   : > { %3571 = vmatprep.subr.bf16.mxu0 %v4194_v0 }
 0x5ad   : > { %v2097_v4 = vpop.f32.mrb[20].mxu1 }
 0x5ae   : > { %v3539_v5 = vpop.f32.mrb[21].mxu1 }
 0x5af   : > { %v2100_v6 = vpop.f32.mrb[22].mxu1 }
 0x5b0   : > { %v3540_v8 = vpop.f32.mrb[23].mxu1 }
 0x5b7   : > { %v2141_v10 = vpop.f32.mrb[24].mxu1 }
 0x5b8   : > { %v3545_v11 = vpop.f32.mrb[25].mxu1 }
 0x5b9   : > { %v2144_v12 = vpop.f32.mrb[26].mxu1 }
 0x5ba   : > { %v3546_v13 = vpop.f32.mrb[27].mxu1 }
 0x5bf   : > { %v2185_v14 = vpop.f32.mrb[28].mxu1 }
 0x5c0   : > { %v2236_v15 = vcombine.low %v2097_v4, %v2185_v14  ;;  %v2237_v16 = vcombine.high %v2097_v4, %v2185_v14  ;;  %v3551_v19 = vpop.f32.mrb[29].mxu1  ;;  %v3766_v4 = vld [vmem:[#allocation13 + $0x30] sm:$0xff]  }
 0x5c1   : > { %v2188_v20 = vpop.f32.mrb[30].mxu1  ;;  %3572 = vmatpush3.bf16.msra.mxu0 %v3766_v4  ;;  %v3771_v4 = vld [vmem:[#allocation15 + $0x10] ss:$8 sps:$4 sm:$0xff]  }
 0x5c2   : > { %v2304_v21 = vcombine.low %v2100_v6, %v2188_v20  ;;  %v2305_v22 = vcombine.high %v2100_v6, %v2188_v20  ;;  %v3552_v23 = vpop.f32.mrb[31].mxu1  ;;  %v2244_v27 = vrot.slane %v2236_v15, %v4704_v61  ;;  %v2251_v28 = vrot.slane %v2237_v16, %v4704_v61  ;;  %3573 = vmatprep.subr.bf16.mxu0 %v4194_v0 }
 0x5c4   : > { %v2312_v41 = vrot.slane %v2304_v21, %v4704_v61  ;;  %v2319_v43 = vrot.slane %v2305_v22, %v4704_v61 }
 0x5c7   : > { %v2229_v24 = vpop.f32.mrb[32].mxu1 }
 0x5c8   : > { %v2252_v18 = vcombine.low %v2141_v10, %v2229_v24  ;;  %v2253_v25 = vcombine.high %v2141_v10, %v2229_v24  ;;  %v3557_v26 = vpop.f32.mrb[33].mxu1 }
 0x5c9   : > { %v2232_v29 = vpop.f32.mrb[34].mxu1 }
 0x5ca   : > { %v2260_v31 = vrot.slane %v2252_v18, %v4704_v61  ;;  %v2267_v32 = vrot.slane %v2253_v25, %v4704_v61  ;;  %v2320_v33 = vcombine.low %v2144_v12, %v2232_v29  ;;  %v2321_v34 = vcombine.high %v2144_v12, %v2232_v29  ;;  %v3558_v35 = vpop.f32.mrb[35].mxu1  ;;  %v3767_v18 = vld [vmem:[#allocation13 + $0x38] sm:$0xff]  }
 0x5cb   : > { %3574 = vmatpush3.bf16.msra.mxu0 %v3767_v18  ;;  %v3788_v18 = vld [vmem:[#allocation15 + $0x64] ss:$8 sps:$4 sm:$0xff]  }
 0x5cc   : > { %v2268_v36 = vcombine.low %v2244_v27, %v2260_v31  ;;  %v2269_v37 = vcombine.high %v2244_v27, %v2260_v31  ;;  %v2284_v38 = vcombine.low %v2251_v28, %v2267_v32  ;;  %v2285_v39 = vcombine.high %v2251_v28, %v2267_v32 }
 0x5cd   : > { %v2328_v44 = vrot.slane %v2320_v33, %v4704_v61  ;;  %v2335_v46 = vrot.slane %v2321_v34, %v4704_v61 }
 0x5ce   : > { %v2276_v47 = vrot.slane %v2268_v36, %v4711_v9  ;;  %v2283_v30 = vrot.slane %v2269_v37, %v4711_v9  ;;  %v2292_v42 = vrot.slane %v2284_v38, %v4711_v9  ;;  %v2299_v48 = vrot.slane %v2285_v39, %v4711_v9 }
 0x5cf   : > { %v2336_v49 = vcombine.low %v2312_v41, %v2328_v44  ;;  %v2337_v50 = vcombine.high %v2312_v41, %v2328_v44  ;;  %v2352_v51 = vcombine.low %v2319_v43, %v2335_v46  ;;  %v2353_v52 = vcombine.high %v2319_v43, %v2335_v46 }
 0x5d0   : > { %v2372_v54 = vcombine.low %v2276_v47, %v2283_v30  ;;  %v3319_v56 = vcombine.high %v2276_v47, %v2283_v30  ;;  %v2388_v40 = vcombine.low %v2292_v42, %v2299_v48  ;;  %v3320_v45 = vcombine.high %v2292_v42, %v2299_v48 }
 0x5d1   : > { %v2344_v58 = vrot.slane %v2336_v49, %v4711_v9  ;;  %v2351_v59 = vrot.slane %v2337_v50, %v4711_v9  ;;  %v2360_v60 = vrot.slane %v2352_v51, %v4711_v9  ;;  %v2367_v62 = vrot.slane %v2353_v52, %v4711_v9 }
 0x5d2   : > { %v2379_v63 = vrot.slane %v2372_v54, %v4704_v61  ;;  %v2387_v1 = vrot.slane %v3319_v56, %v4704_v61  ;;  %v2395_v57 = vrot.slane %v2388_v40, %v4704_v61  ;;  %v2403_v53 = vrot.slane %v3320_v45, %v4704_v61  ;;  %v3323_v40 = vld [vmem:[%s5118_s4 + $0x3] ss:$0 sm:$0xff] }
 0x5d3   : > { %v2440_v2 = vcombine.low %v2344_v58, %v2351_v59  ;;  %v3321_v3 = vcombine.high %v2344_v58, %v2351_v59  ;;  %v2456_v17 = vcombine.low %v2360_v60, %v2367_v62  ;;  %v3322_v7 = vcombine.high %v2360_v60, %v2367_v62 }
 0x5d4   : > { %v2405_v5 = vcombine.high %v2379_v63, %v2387_v1  ;;  %v2421_v6 = vcombine.high %v2395_v57, %v2403_v53  ;;  %v2404_v8 = vcombine.low %v2379_v63, %v2387_v1  ;;  %v2420_v10 = vcombine.low %v2395_v57, %v2403_v53  ;;  %v3848_v1 = vld [vmem:[%s4590_s6] sm:$0xff]  ;;  %v3849_v53 = vld [vmem:[%s4590_s6 + $0x8] sm:$0xff]  ;;  %s3063_s6 = scalar_lea.sflag [#allocation6], %s4583_s7 }
 0x5d5   : > { %v2447_v11 = vrot.slane %v2440_v2, %v4704_v61  ;;  %v2455_v12 = vrot.slane %v3321_v3, %v4704_v61  ;;  %v2463_v13 = vrot.slane %v2456_v17, %v4704_v61  ;;  %v2471_v14 = vrot.slane %v3322_v7, %v4704_v61  ;;  %v3768_v3 = vld [vmem:[#allocation15] ss:$8 sps:$4 sm:$0xff]   ;;  %v3770_v17 = vld [vmem:[#allocation15 + $0x4] ss:$8 sps:$4 sm:$0xff]   ;;  %v3773_v7 = vld [vmem:[#allocation15 + $0x14] ss:$8 sps:$4 sm:$0xff]  }
 0x5d6   : > { %v2419_v15 = vrot.slane %v2405_v5, %v4711_v9  ;;  %v2435_v16 = vrot.slane %v2421_v6, %v4711_v9  ;;  %v2412_v19 = vrot.slane %v2404_v8, %v4711_v9  ;;  %v2428_v20 = vrot.slane %v2420_v10, %v4711_v9  ;;  %2799 = vmatprep.subr.bf16.mxu1 %v3770_v17 }
 0x5d7   : > { %v2473_v21 = vcombine.high %v2447_v11, %v2455_v12  ;;  %v2489_v22 = vcombine.high %v2463_v13, %v2471_v14  ;;  %v2472_v23 = vcombine.low %v2447_v11, %v2455_v12  ;;  %v2488_v24 = vcombine.low %v2463_v13, %v2471_v14  ;;  %2800 = vmatpush1.bf16.msra.mxu1 %v3768_v3 }
 0x5d8   : > { %v2438_v25 = vcombine.low %v2419_v15, %v2435_v16  ;;  %v2436_v26 = vcombine.low %v2412_v19, %v2428_v20  ;;  %v2437_v27 = vcombine.high %v2412_v19, %v2428_v20  ;;  %v2439_v61 = vcombine.high %v2419_v15, %v2435_v16  ;;  %2801 = vmatprep.subr.bf16.mxu1 %v3773_v7  ;;  %v3776_v15 = vld [vmem:[#allocation15 + $0x24] ss:$8 sps:$4 sm:$0xff]   ;;  %v3774_v16 = vld [vmem:[#allocation15 + $0x20] ss:$8 sps:$4 sm:$0xff]   ;;  %v3779_v19 = vld [vmem:[#allocation15 + $0x34] ss:$8 sps:$4 sm:$0xff]  }
 0x5d9   : > { %v2487_v28 = vrot.slane %v2473_v21, %v4711_v9  ;;  %v2503_v29 = vrot.slane %v2489_v22, %v4711_v9  ;;  %v2480_v31 = vrot.slane %v2472_v23, %v4711_v9  ;;  %v2496_v32 = vrot.slane %v2488_v24, %v4711_v9  ;;  %v3777_v20 = vld [vmem:[#allocation15 + $0x30] ss:$8 sps:$4 sm:$0xff]   ;;  %v3782_v21 = vld [vmem:[#allocation15 + $0x44] ss:$8 sps:$4 sm:$0xff]   ;;  %v3780_v22 = vld [vmem:[#allocation15 + $0x40] ss:$8 sps:$4 sm:$0xff]  }
 0x5da   : > { %v3785_v23 = vld [vmem:[#allocation15 + $0x54] ss:$8 sps:$4 sm:$0xff]   ;;  %v3783_v24 = vld [vmem:[#allocation15 + $0x50] ss:$8 sps:$4 sm:$0xff]  }
 0x5db   : > { %v2506_v33 = vcombine.low %v2487_v28, %v2503_v29  ;;  %v2505_v0 = vcombine.high %v2480_v31, %v2496_v32  ;;  %v2504_v34 = vcombine.low %v2480_v31, %v2496_v32  ;;  %v2507_v35 = vcombine.high %v2487_v28, %v2503_v29  ;;  %2802 = vmatpush1.bf16.msra.mxu1 %v3771_v4  ;;  %v3792_v28 = vld [vmem:[#allocation16 + $0x40] sm:$0xff]   ;;  %v3794_v31 = vld [vmem:[#allocation16 + $0x48] sm:$0xff]  }
 0x5dc   : > { %2803 = vmatprep.subr.bf16.mxu1 %v3776_v15  ;;  %v3793_v29 = vld [vmem:[#allocation16] sm:$0xff]   ;;  %3429 = vmatprep.subr.bf16.mxu0 %v3792_v28  ;;  %v3795_v32 = vld [vmem:[#allocation16 + $0x8] sm:$0xff]  }
 0x5dd   : > { %v3726_v36 = vpack.i.bf16 %v2506_v33, %v2438_v25  ;;  %v3721_v37 = vpack.i.bf16 %v2505_v0, %v2437_v27  ;;  %v3731_v38 = vpack.i.bf16 %v2507_v35, %v2439_v61  ;;  %v3786_v25 = vld [vmem:[#allocation15 + $0x60] ss:$8 sps:$4 sm:$0xff]   ;;  %v3789_v27 = vld [vmem:[#allocation15 + $0x70] ss:$8 sps:$4 sm:$0xff]   ;;  %v4201_v61 = vmov 0  }
 0x5de   : > { %2831 = vmatprep.mubr.bf16.mxu1 %v4201_v61  ;;  %v3796_v33 = vld [vmem:[#allocation16 + $0x50] sm:$0xff]   ;;  %v3799_v35 = vld [vmem:[#allocation16 + $0x18] sm:$0xff]  }
 0x5df   : > { %3727 = vrot.lane.b32.xlu0 %v3726_v36, %s4196_s2  ;;  %3722 = vrot.lane.b32.xlu1 %v3721_v37, %s4198_s23  ;;  %v3797_v0 = vld [vmem:[#allocation16 + $0x10] sm:$0xff]   ;;  %v3800_v36 = vld [vmem:[#allocation16 + $0x60] sm:$0xff]   ;;  %s5120_s2 = sld [smem:[#allocation26_spill]] }
 0x5e0   : > { %2804 = vmatpush1.bf16.msra.mxu1 %v3774_v16  ;;  %v3801_v37 = vld [vmem:[#allocation16 + $0x20] sm:$0xff]  }
 0x5e1   : > { %2805 = vmatprep.subr.bf16.mxu1 %v3779_v19 }
 0x5e3   : > { %3732 = vrot.lane.b32.xlu1 %v3731_v38, %s4197_s12  ;;  %v3802_v38 = vld [vmem:[#allocation16 + $0x68] sm:$0xff]  }
 0x5e4   : > { %2806 = vmatpush1.bf16.msra.mxu1 %v3777_v20 }
 0x5e5   : > { %2807 = vmatprep.subr.bf16.mxu1 %v3782_v21  ;;  %s3376_s25 = sshll.u32 %s5120_s2, 8 }
 0x5e6   : > { %s5007_s30 = scalar_lea.hbm %s5121_s0, %s3376_s25 }
 0x5e8   : > { %2808 = vmatpush1.bf16.msra.mxu1 %v3780_v22 }
 0x5e9   : > { %2809 = vmatprep.subr.bf16.mxu1 %v3785_v23 }
 0x5ec   : > { %2810 = vmatpush1.bf16.msra.mxu1 %v3783_v24 }
 0x5ed   : > { %2811 = vmatprep.subr.bf16.mxu1 %v3788_v18 }
 0x5f0   : > { %2812 = vmatpush1.bf16.msra.mxu1 %v3786_v25 }
 0x651   : > { %v3728_v39 = vpop.permute.xlu0 %3727  ;;  %v3723_v41 = vpop.permute.xlu1 %3722 }
 0x652   : > { %v3725_v43 = vunpack.i.h.bf16 %v3723_v41  ;;  %v3724_v44 = vunpack.i.l.bf16 %v3723_v41  ;;  %v3730_v46 = vunpack.i.h.bf16 %v3728_v39  ;;  %v3729_v9 = vunpack.i.l.bf16 %v3728_v39 }
 0x654   : > { %v2532_v47 = vsel %vm1049_vm1, %v2436_v26, %v3724_v44  ;;  %v2533_v30 = vsel %vm1049_vm1, %v2504_v34, %v3725_v43  ;;  %v3791_v26 = vld [vmem:[#allocation15 + $0x74] ss:$8 sps:$4 sm:$0xff]  }
 0x655   : > { %v3733_v42 = vpop.permute.xlu1 %3732  ;;  %v2535_v50 = vsel %vm2534_vm3, %v2532_v47, %v3729_v9  ;;  %v2536_v51 = vsel %vm2534_vm3, %v2533_v30, %v3730_v46  ;;  %2813 = vmatprep.subr.bf16.mxu1 %v3791_v26  ;;  %v3798_v34 = vld [vmem:[#allocation16 + $0x58] sm:$0xff]   ;;  %v3332_v30 = vld [vmem:[%s5118_s4 + $0x5] ss:$0 sm:$0xff] }
 0x656   : > { %v3735_v48 = vunpack.i.h.bf16 %v3733_v42  ;;  %v3734_v49 = vunpack.i.l.bf16 %v3733_v42  ;;  %2814 = vmatpush1.bf16.msra.mxu1 %v3789_v27 }
 0x658   : > { %v2538_v52 = vsel %vm2537_vm4, %v2535_v50, %v3734_v49  ;;  %v2539_v54 = vsel %vm2537_vm4, %v2536_v51, %v3735_v48  ;;  %v3333_v51 = vld [vmem:[%s5118_s4 + $0x6] ss:$0 sm:$0xff] }
 0x659   : > { %v2540_v56 = vpack.c.bf16 %v2539_v54, %v2538_v52 }
 0x65b   : > { %3576 = vmatmul.mubr.bf16.vlgmr.msra.gmra.mrb[8].mxu0 %v2540_v56 }
 0x65c   : > { %3430 = vmatpush3.bf16.msra.mxu0 %v3793_v29 }
 0x65d   : > { %3431 = vmatprep.subr.bf16.mxu0 %v3794_v31 }
 0x660   : > { %3432 = vmatpush3.bf16.msra.mxu0 %v3795_v32 }
 0x661   : > { %3433 = vmatprep.subr.bf16.mxu0 %v3796_v33 }
 0x664   : > { %3434 = vmatpush3.bf16.msra.mxu0 %v3797_v0 }
 0x665   : > { %3435 = vmatprep.subr.bf16.mxu0 %v3798_v34 }
 0x668   : > { %3436 = vmatpush3.bf16.msra.mxu0 %v3799_v35 }
 0x669   : > { %3437 = vmatprep.subr.bf16.mxu0 %v3800_v36 }
 0x66c   : > { %3438 = vmatpush3.bf16.msra.mxu0 %v3801_v37 }
 0x66d   : > { %3439 = vmatprep.subr.bf16.mxu0 %v3802_v38 }
 0x72e   : > { %v2644_v45 = vpop.f32.mrb[8].mxu0 }
 0x72f   : > { %v2645_v58 = vadd.f32 %v3323_v40, %v2644_v45  ;;  %v3577_v59 = vpop.f32.mrb[9].mxu0  ;;  %v3803_v45 = vld [vmem:[#allocation16 + $0x28] sm:$0xff]  }
 0x730   : > { %v2647_v60 = vpop.f32.mrb[10].mxu0  ;;  %3440 = vmatpush3.bf16.msra.mxu0 %v3803_v45  ;;  %v3805_v59 = vld [vmem:[#allocation16 + $0x30] sm:$0xff]  }
 0x731   : > { %v2648_v62 = vadd.f32 %v3323_v40, %v2647_v60  ;;  %v3578_v63 = vpop.f32.mrb[11].mxu0  ;;  %v2651_v57 = vadd.f32 %v3848_v1, %v2645_v58  ;;  %v3804_v58 = vld [vmem:[#allocation16 + $0x70] sm:$0xff]   ;;  %v3806_v60 = vld [vmem:[#allocation16 + $0x78] sm:$0xff]   ;;  %v2707_v1 = vld [vmem:[%s5119_s3] sm:$0x3]  ;;  %s4084_s3 = scalar_lea.vmem %s4083_s29, 512 }
 0x732   : > { %3441 = vmatprep.subr.bf16.mxu0 %v3804_v58  ;;  %v2711_v63 = vsub.s32 0, %v4701_v55  ;;  %p4086_p1 = scmp.lt.s32.totalorder %s4084_s3, %s4078_s20 }
 0x733   : > { %2655 = vadd.xlane.f32.xlu1 %v2651_v57  ;;  %v2652_v2 = vadd.f32 %v3849_v53, %v2648_v62  ;;  %v3807_v62 = vld [vmem:[#allocation16 + $0x38] sm:$0xff]  }
 0x734   : > { %3442 = vmatpush3.bf16.msra.mxu0 %v3805_v59  ;;  %v2712_v53 = vrot.slane %v2707_v1, %v2711_v63  ;;  %p4087_p10 = por %p4086_p1, %p4085_p5 }
 0x735   : > { %2657 = vadd.xlane.f32.xlu0 %v2652_v2  ;;  %3443 = vmatprep.subr.bf16.mxu0 %v3806_v60 }
 0x736   : > { %p4088_p11 = pnand %p4087_p10, %p4081_p7 }
 0x738   : > { %3444 = vmatpush3.bf16.msra.mxu0 %v3807_v62 }
 0x7c0   : > { %v2656_v5 = vpop.xlane.xlu1 %2655 }
 0x7c1   : > { %v2660_v6 = vmul.f32 0.0078125, %v2656_v5 }
 0x7c2   : > { %v2658_v8 = vpop.xlane.xlu0 %2657 }
 0x7c3   : > { %v4972_v10 = vsub.f32 %v2651_v57, %v2660_v6  ;;  %v2661_v11 = vmul.f32 0.0078125, %v2658_v8  ;;  %v2715_v57 = vsub.s32 1, %v4701_v55  ;;  %v3350_v55 = vld [vmem:[%s5118_s4 + $0x4] ss:$0 sm:$0xff] }
 0x7c5   : > { %v4974_v12 = vsub.f32 %v2652_v2, %v2661_v11  ;;  %v2664_v13 = vmul.f32 %v4972_v10, %v4972_v10  ;;  %v2716_v2 = vrot.slane %v2707_v1, %v2715_v57 }
 0x7c7   : > { %2666 = vadd.xlane.f32.xlu0 %v2664_v13  ;;  %v2665_v14 = vmul.f32 %v4974_v12, %v4974_v12 }
 0x7c9   : > { %2668 = vadd.xlane.f32.xlu1 %v2665_v14 }
 0x854   : > { %v2667_v39 = vpop.xlane.xlu0 %2666 }
 0x855   : > { %v2670_v41 = vmul.f32 0.0078125, %v2667_v39 }
 0x856   : > { %v2669_v43 = vpop.xlane.xlu1 %2668 }
 0x857   : > { %v2672_v44 = vadd.f32 1e-05, %v2670_v41  ;;  %v2671_v46 = vmul.f32 0.0078125, %v2669_v43 }
 0x859   : > { %3840 = vrsqrt.f32 %v2672_v44  ;;  %v2673_v9 = vadd.f32 1e-05, %v2671_v46  ;;  %v3367_v44 = vld [vmem:[%s5118_s4 + $0x7] ss:$0 sm:$0xff] }
 0x85b   : > { %3842 = vrsqrt.f32 %v2673_v9 }
 0x863   : > { %v3841_v47 = vpop.eup %3840 }
 0x864   : > { %v2676_v42 = vmul.f32 %v3841_v47, %v4972_v10  ;;  %v3368_v47 = vld [vmem:[%s5118_s4 + $0x8] ss:$0 sm:$0xff] }
 0x865   : > { %v3843_v48 = vpop.eup %3842 }
 0x866   : > { %v2677_v49 = vmul.f32 %v3843_v48, %v4974_v12  ;;  %v2682_v50 = vmul.f32 %v3332_v30, %v2676_v42 }
 0x868   : > { %v2683_v52 = vmul.f32 %v3332_v30, %v2677_v49  ;;  %v2688_v54 = vadd.f32 %v3333_v51, %v2682_v50 }
 0x86a   : > { %v2689_v56 = vadd.f32 %v3333_v51, %v2683_v52 }
 0x86c   : > { %v2690_v40 = vpack.c.bf16 %v2689_v56, %v2688_v54 }
 0x86e   : > { %2832 = vmatmul.mubr.bf16.vlgmr.msra.gmra.mrb[36].mxu1 %v2690_v40 }
 0x941   : > { %v2833_v3 = vpop.f32.mrb[36].mxu1 }
 0x942   : > { %v2834_v17 = vadd.f32 %v2833_v3, %v2712_v53  ;;  %v2835_v7 = vpop.f32.mrb[37].mxu1 }
 0x943   : > { %v2836_v4 = vadd.f32 %v2835_v7, %v2716_v2  ;;  %v2837_v5 = vpop.f32.mrb[38].mxu1 }
 0x944   : > { %v2838_v6 = vadd.f32 %v2837_v5, %v2712_v53  ;;  %v2839_v8 = vpop.f32.mrb[39].mxu1  ;;  %v2842_v11 = vmax.f32 %v2834_v17, 0.0 }
 0x945   : > { %v2840_v10 = vadd.f32 %v2839_v8, %v2716_v2  ;;  %v2843_v13 = vmax.f32 %v2836_v4, 0.0 }
 0x946   : > { %v2844_v12 = vmax.f32 %v2838_v6, 0.0 }
 0x947   : > { %v2845_v14 = vmax.f32 %v2840_v10, 0.0 }
 0x948   : > { %v2846_v15 = vpack.c.bf16 %v2844_v12, %v2842_v11 }
 0x949   : > { %v2847_v16 = vpack.c.bf16 %v2845_v14, %v2843_v13 }
 0x94b   : > { %3013 = vmatprep.mubr.bf16.mxu0 %v2847_v16 }
 0x94c   : > { %3014 = vmatmul.mubr.bf16.vlgmr.msra.gmra.mrb[12].mxu0 %v2846_v15 }
 0xa1f   : > { %v3445_v19 = vpop.f32.mrb[12].mxu0 }
 0xa20   : > { %v3446_v20 = vpop.f32.mrb[13].mxu0 }
 0xa21   : > { %v3447_v21 = vadd.f32 %v3446_v20, %v3445_v19  ;;  %v3448_v22 = vpop.f32.mrb[14].mxu0 }
 0xa22   : > { %v3449_v23 = vpop.f32.mrb[15].mxu0 }
 0xa23   : > { %v3016_v24 = vadd.f32 %v3447_v21, %v3350_v55  ;;  %v3450_v18 = vadd.f32 %v3449_v23, %v3448_v22 }
 0xa25   : > { %v3019_v25 = vadd.f32 %v3450_v18, %v3350_v55  ;;  %v3022_v26 = vadd.f32 %v3016_v24, %v2688_v54 }
 0xa27   : > { %3026 = vadd.xlane.f32.xlu0 %v3022_v26  ;;  %v3023_v27 = vadd.f32 %v3019_v25, %v2689_v56 }
 0xa29   : > { %3028 = vadd.xlane.f32.xlu1 %v3023_v27 }
 0xab4   : > { %v3027_v61 = vpop.xlane.xlu0 %3026 }
 0xab5   : > { %v3030_v28 = vmul.f32 0.0078125, %v3027_v61 }
 0xab6   : > { %v3029_v29 = vpop.xlane.xlu1 %3028 }
 0xab7   : > { %v3032_v31 = vsub.f32 %v3022_v26, %v3030_v28  ;;  %v3031_v32 = vmul.f32 0.0078125, %v3029_v29 }
 0xab9   : > { %v3033_v33 = vsub.f32 %v3023_v27, %v3031_v32  ;;  %v3034_v0 = vmul.f32 %v3032_v31, %v3032_v31 }
 0xabb   : > { %3036 = vadd.xlane.f32.xlu0 %v3034_v0  ;;  %v3035_v34 = vmul.f32 %v3033_v33, %v3033_v33 }
 0xabd   : > { %3038 = vadd.xlane.f32.xlu1 %v3035_v34 }
 0xb48   : > { %v3037_v35 = vpop.xlane.xlu0 %3036 }
 0xb49   : > { %v3040_v36 = vmul.f32 0.0078125, %v3037_v35 }
 0xb4a   : > { %v3039_v37 = vpop.xlane.xlu1 %3038 }
 0xb4b   : > { %v3042_v38 = vadd.f32 1e-05, %v3040_v36  ;;  %v3041_v39 = vmul.f32 0.0078125, %v3039_v37 }
 0xb4d   : > { %3844 = vrsqrt.f32 %v3042_v38  ;;  %v3043_v41 = vadd.f32 1e-05, %v3041_v39 }
 0xb4f   : > { %3846 = vrsqrt.f32 %v3043_v41 }
 0xb57   : > { %v3845_v43 = vpop.eup %3844 }
 0xb58   : > { %v3046_v46 = vmul.f32 %v3845_v43, %v3032_v31 }
 0xb59   : > { %v3847_v9 = vpop.eup %3846 }
 0xb5a   : > { %v3052_v30 = vmul.f32 %v3367_v44, %v3046_v46  ;;  %v3047_v42 = vmul.f32 %v3847_v9, %v3033_v33 }
 0xb5c   : > { %v3058_v48 = vadd.f32 %v3368_v47, %v3052_v30  ;;  %v3053_v49 = vmul.f32 %v3367_v44, %v3047_v42 }
 0xb5e   : > { %v3059_v50 = vadd.f32 %v3368_v47, %v3053_v49  ;;  %3060 = vst [vmem:[%s518_s5] sm:$0xff] %v3058_v48 }
 0xb60   : > { %3061 = vst [vmem:[%s518_s5 + $0x8] sm:$0xff] %v3059_v50 }
 0xb61   : > { %4091 = shalt.err (!%p4088_p11)
}
 0xb62   : > { %s4092_s19 = scalar_lea.hbm %s5007_s30, 256  ;;  %s4096_s12 = scalar_lea.hbm %s5121_s0, 512 }
 0xb63   : > { %p4093_p8 = scmp.ne.s32.totalorder %s5007_s30, %s4092_s19  ;;  %p4097_p6 = scmp.lt.u32.totalorder %s5007_s30, %s5121_s0 }
 0xb64   : > { %p4098_p2 = scmp.lt.u32.totalorder %s4096_s12, %s4092_s19  ;;  %p4100_p4 = scmp.lt.u32.totalorder %s4092_s19, %s5007_s30 }
 0xb65   : > { %p4094_p3 = pnand %p4093_p8, %p5122_p9 }
 0xb66   : > { %p4099_p13 = por %p4098_p2, %p4097_p6 }
 0xb67   : > { %p4095_p12 = pneg %p4094_p3 }
 0xb68   : > { %p4101_p0 = por %p4100_p4, %p4099_p13 }
 0xb6a   : > { %p4102_p7 = pnand %p4101_p0, %p4095_p12 }
 0xb6c   : > { %4105 = shalt.err (!%p4102_p7)
}
 0xb6d   : > { %s4203_s22 = smov 128   ;;  %s4204_s25 = smov 8  }
 0xb6e   : > { %3607 = dma.vmem_to_hbm [thread:$0]  (%p5122_p9), %s5009_s27, 256, %s5007_s30, %s3063_s6, %s4203_s22, %s4203_s22, %s4204_s25  }
 0xb6f PF: > { %s3093_s5 = sand.u32 1, %s4160_s13   ;;  %p5123_p5 = scmp.ne.s32.totalorder %s5104_s28, 0 }
 0xb70   : > { %p5124_p1 = scmp.ge.s32.totalorder %s4180_s18, 2  ;;  %s3094_s11 = scalar_lea.sflag [#allocation6], %s3093_s5 }
 0xb72   : > { %p3636_p10 = pnand %p5124_p1, %p5123_p5 }
 0xb74   : > { %4155 = dma.done.wait (!%p3636_p10), %s3094_s11, 256  }
 0xb75   : > { %4157 = vsyncadd (!%p3636_p10), %s3094_s11, 4294967040  ;;  %s32_s18 = sadd.s32 1, %s4180_s18   ;;  %s5125_s13 = smov %s4164_s14 }
 0xb76   : > { %p29_p11 = scmp.ge.s32.totalorder %s32_s18, 4   ;;  %s5126_s14 = smov %s4168_s15 }
 0xb77   : > { %s5127_s15 = smov %s4486_s26  ;;  %s5128_s16 = smov %s4176_s17 }
 0xb78   : > { %s5129_s17 = smov %s5131_s21  ;;  %31 = sbr.rel (!%p29_p11) target bundleno = 22 (0x16), region = 148 }
 0xb7f   :  { %3099 = vsyncpa [#allocation5], 1 }
 0xb80   :  { %3101 = vsyncpa [#allocation5 + $0x1], 1 }
 0xb81   :  { %3102 = vsyncpa [#allocation8], 1 }
 0xb82   :  { %3104 = vsyncpa [#allocation8 + $0x1], 1 }
 0xb83   :  { %3105 = vsyncpa [#allocation11], 1 }
 0xb84   :  { %3106 = vsyncpa [#allocation14], 1 }
 0xb85   :  { %3107 = vsyncpa [#allocation17], 1 }
 0xb86   :  { %3108 = vsyncpa [#allocation6], 1 }
 0xb87   :  { %3110 = vsyncpa [#allocation6 + $0x1], 1 }

</bundles_post_ra>
